<compile_context>
chip_gen: v5e
topology: v5e:2x2
jax: 0.10.0
libtpu: 0.0.40
codegen_flags: <defaults>
</compile_context>

<pallas_src>
import jax
import jax.numpy as jnp
from jax.experimental import pallas as pl
from jax.experimental.pallas import tpu as pltpu


def _simple_cnn_kernel(x_ref, w1_ref, b1_ref, w2_ref, b2_ref, wf_ref, bf_ref, o_ref):
    M, Cin = x_ref.shape                 # M = BB * T rows of (batch, time)
    BB = o_ref.shape[0]
    T = M // BB

    # f32 -> bf16 cast in-kernel (VPU, hidden under MXU work).
    x = x_ref[...].astype(jnp.bfloat16)

    # Per-row time index within its batch element; boundary predicates for shifted taps.
    t_idx = jax.lax.broadcasted_iota(jnp.int32, (M, 1), 0) % T
    not_first = t_idx != 0               # rows where x[t-1] exists (same batch element)
    not_last = t_idx != (T - 1)          # rows where x[t+1] exists (same batch element)

    def conv_relu(xb, w_ref, b_ref):
        # Conv1d(kernel=3, padding=1) as ONE fused im2col matmul:
        #   lhs = [x(t-1) | x(t) | x(t+1)]  (M, 3*Cp) bf16,  w packed as (3*Cp, Cout).
        # Boundary/wrap rows of the shifted slabs are zeroed on the bf16 LHS, so folding
        # the batch into M never mixes neighboring batch elements or wraps the block.
        cp = w_ref.shape[0] // 3
        if xb.shape[1] < cp:             # lane-pad Cin so slabs sit at offsets 0/cp/2cp
            xb = jnp.concatenate(
                [xb, jnp.zeros((xb.shape[0], cp - xb.shape[1]), xb.dtype)], axis=-1)
        zero = jnp.zeros_like(xb)
        x_prev = jnp.where(not_first, jnp.roll(xb, 1, axis=0), zero)    # x[t-1]
        x_next = jnp.where(not_last, jnp.roll(xb, -1, axis=0), zero)    # x[t+1]
        lhs = jnp.concatenate([x_prev, xb, x_next], axis=-1)            # (M, 3*cp)
        y = jnp.dot(lhs, w_ref[...], preferred_element_type=jnp.float32) + b_ref[...]
        return jnp.maximum(y, 0.0)

    h1 = conv_relu(x, w1_ref, b1_ref)                          # (M, 64)   f32
    h2 = conv_relu(h1.astype(jnp.bfloat16), w2_ref, b2_ref)    # (M, 128)  f32

    # Adaptive avg pool over T, batched: (BB, 128)
    pooled = jnp.mean(h2.reshape(BB, T, h2.shape[-1]), axis=1)
    # FC: one (BB, 128) @ (128, 2) matmul + bias, single (BB, 2) store.
    out = jnp.dot(pooled, wf_ref[...], preferred_element_type=jnp.float32) + bf_ref[...]
    o_ref[...] = out.astype(o_ref.dtype)


def _choose_block_batch(B, T):
    """Pick BB (batch elements per grid step).

    Targets M = BB*T ~ 4096 on v5e/v6e (128 MiB VMEM, 1 TC: fewest, largest steps) and
    ~2048 with >=2 grid steps on v7x (64 MiB VMEM, 2 TCs: shard the parallel grid axis).
    BB is always a multiple of 8 (sublane-aligned (BB, 2) output block) and prefers a
    divisor of B so the wrapper never needs a padding pass over x.
    """
    t = max(T, 1)
    target_m, two_core = 4096, False
    try:
        info = pltpu.get_tpu_info()
        if getattr(info, "vmem_capacity_bytes", 128 << 20) <= (64 << 20):
            target_m, two_core = 2048, True      # v7x-class chip
    except Exception:
        pass
    bb = max(8, (target_m // t) // 8 * 8)
    if two_core and B >= 16:
        bb = min(bb, max(8, (B // 2) // 8 * 8))  # guarantee >=2 steps for 2 TensorCores
    for cand in range(min(bb, (B // 8) * 8), 7, -8):
        if B % cand == 0:                        # divisor of B -> no pad pass over x
            return cand
    return min(bb, max(8, ((B + 7) // 8) * 8))


def _pack_conv_weight(w):
    """(3, Cin, Cout) f32 -> (3*Cp, Cout) bf16 im2col weight, Cp = Cin padded to mult of 64."""
    k, cin, cout = w.shape
    cp = ((cin + 63) // 64) * 64
    wp = jnp.pad(w, ((0, 0), (0, cp - cin), (0, 0)))
    return wp.reshape(k * cp, cout).astype(jnp.bfloat16)


def simple_cnn_forward(x_btc, params, block_batch=None):
    """x_btc: (B, T, Cin) float32.  Returns logits (B, 2) float32."""
    B, T, Cin = x_btc.shape
    w1, b1, w2, b2, wf, bf = params

    BB = block_batch if block_batch is not None else _choose_block_batch(B, T)
    BB = max(8, ((BB + 7) // 8) * 8)             # enforce valid (BB, 2) output block
    n_steps = pl.cdiv(B, BB)
    B_pad = n_steps * BB

    # Flatten to (B*T, Cin): the x block becomes a plain 2-D (BB*T, Cin) slab.
    x_flat = x_btc.reshape(B * T, Cin)
    if B_pad != B:
        # Only taken when no multiple-of-8 divisor of B fits; one extra HBM pass over x.
        x_flat = jnp.pad(x_flat, ((0, (B_pad - B) * T), (0, 0)))

    # im2col weight packing (tiny, once per call); biases / FC stay f32.
    w1p = _pack_conv_weight(w1)                  # (3*64, 64)   bf16
    w2p = _pack_conv_weight(w2)                  # (3*64, 128)  bf16

    full = lambda a: pl.BlockSpec(a.shape, lambda i: (0,) * a.ndim)

    out = pl.pallas_call(
        _simple_cnn_kernel,
        out_shape=jax.ShapeDtypeStruct((B_pad, 2), jnp.float32),
        grid=(n_steps,),
        in_specs=[
            pl.BlockSpec((BB * T, Cin), lambda i: (i, 0)),   # x rows (f32, cast in-kernel)
            full(w1p),                                       # (192, 64)   bf16
            full(b1),                                        # (1, 64)     f32
            full(w2p),                                       # (192, 128)  bf16
            full(b2),                                        # (1, 128)    f32
            full(wf),                                        # (128, 2)    f32
            full(bf),                                        # (1, 2)      f32
        ],
        out_specs=pl.BlockSpec((BB, 2), lambda i: (i, 0)),
        compiler_params=pltpu.CompilerParams(
            dimension_semantics=("parallel",)),
    )(x_flat, w1p, b1, w2p, b2, wf, bf)
    return out[:B]


def _reference_forward(x_btc, params):
    """Pure-JAX f32 reference mirroring the PyTorch forward (for sanity checking)."""
    w1, b1, w2, b2, wf, bf = params

    def conv(x, w, b):
        B, T, Cin = x.shape
        xpad = jnp.pad(x, ((0, 0), (1, 1), (0, 0)))
        y = jnp.zeros((B, T, w.shape[-1]), jnp.float32)
        for k in range(3):
            y = y + jnp.einsum("bti,io->bto", xpad[:, k:k + T, :], w[k])
        return y + b[None]

    h1 = jax.nn.relu(conv(x_btc, w1, b1))
    h2 = jax.nn.relu(conv(h1, w2, b2))
    pooled = jnp.mean(h2, axis=1)                # (B, 128) == AdaptiveAvgPool1d(1)
    return pooled @ wf + bf


def make_params(key, input_dim=40):
    ks = jax.random.split(key, 6)
    scale = 0.05
    w1 = (scale * jax.random.normal(ks[0], (3, input_dim, 64))).astype(jnp.float32)
    b1 = (scale * jax.random.normal(ks[1], (1, 64))).astype(jnp.float32)
    w2 = (scale * jax.random.normal(ks[2], (3, 64, 128))).astype(jnp.float32)
    b2 = (scale * jax.random.normal(ks[3], (1, 128))).astype(jnp.float32)
    wf = (scale * jax.random.normal(ks[4], (128, 2))).astype(jnp.float32)
    bf = (scale * jax.random.normal(ks[5], (1, 2))).astype(jnp.float32)
    return (w1, b1, w2, b2, wf, bf)


if __name__ == "__main__":
    key = jax.random.PRNGKey(0)
    B, Cin, T = 8, 40, 16
    kx, kp = jax.random.split(key)
    # PyTorch input layout is (B, Cin, T); kernel layout is (B, T, Cin).
    x_nct = jax.random.normal(kx, (B, Cin, T), dtype=jnp.float32)
    x_btc = jnp.transpose(x_nct, (0, 2, 1))

    params = make_params(kp, input_dim=Cin)

    out = jax.block_until_ready(simple_cnn_forward(x_btc, params))

    ref = _reference_forward(x_btc, params)
    assert out.shape == (B, 2)
    # bf16 matmul operands with f32 accumulation -> loose-but-safe tolerance vs f32 ref.
    assert jnp.allclose(out, ref, atol=2e-2, rtol=2e-2), (out, ref)

    print("KERNEL_OK")
</pallas_src>

<mosaic_0001>
module attributes {stable_mosaic.version = 11 : i64} {
  func.func @_simple_cnn_kernel(%arg0: i32, %arg1: memref<128x40xf32, #tpu.memory_space<vmem>>, %arg2: memref<192x64xbf16, #tpu.memory_space<vmem>>, %arg3: memref<1x64xf32, #tpu.memory_space<vmem>>, %arg4: memref<192x128xbf16, #tpu.memory_space<vmem>>, %arg5: memref<1x128xf32, #tpu.memory_space<vmem>>, %arg6: memref<128x2xf32, #tpu.memory_space<vmem>>, %arg7: memref<1x2xf32, #tpu.memory_space<vmem>>, %arg8: memref<8x2xf32, #tpu.memory_space<vmem>>) attributes {dimension_semantics = [#tpu.dimension_semantics<parallel>], iteration_bounds = array<i64: 1>, scalar_prefetch = 0 : i64, scratch_operands = 0 : i64, tpu.core_type = #tpu.core_type<tc>, window_params = [{transform_indices = @transform_0, window_bounds = array<i64: 128, 40>}, {pipeline_mode = #tpu.pipeline_mode<synchronous>, transform_indices = @transform_1, window_bounds = array<i64: 192, 64>}, {pipeline_mode = #tpu.pipeline_mode<synchronous>, transform_indices = @transform_2, window_bounds = array<i64: 1, 64>}, {pipeline_mode = #tpu.pipeline_mode<synchronous>, transform_indices = @transform_3, window_bounds = array<i64: 192, 128>}, {pipeline_mode = #tpu.pipeline_mode<synchronous>, transform_indices = @transform_4, window_bounds = array<i64: 1, 128>}, {pipeline_mode = #tpu.pipeline_mode<synchronous>, transform_indices = @transform_5, window_bounds = array<i64: 128, 2>}, {pipeline_mode = #tpu.pipeline_mode<synchronous>, transform_indices = @transform_6, window_bounds = array<i64: 1, 2>}, {transform_indices = @transform_7, window_bounds = array<i64: 8, 2>}]} {
    %c0 = arith.constant 0 : index
    %c0_0 = arith.constant 0 : index
    %0 = vector.load %arg1[%c0, %c0_0] : memref<128x40xf32, #tpu.memory_space<vmem>>, vector<128x40xf32>
    %1 = arith.truncf %0 : vector<128x40xf32> to vector<128x40xbf16>
    %2 = tpu.iota {dimensions = array<i32: 0>} : vector<128x1xi32>
    %c16_i32 = arith.constant 16 : i32
    %c0_i32 = arith.constant 0 : i32
    %3 = arith.cmpi eq, %c16_i32, %c0_i32 : i32
    %c1_i32 = arith.constant 1 : i32
    %4 = arith.select %3, %c1_i32, %c16_i32 : i32
    %5 = vector.broadcast %4 : i32 to vector<128x1xi32>
    %6 = arith.remsi %2, %5 : vector<128x1xi32>
    %c0_i32_1 = arith.constant 0 : i32
    %7 = vector.broadcast %c0_i32_1 : i32 to vector<128x1xi32>
    %8 = arith.cmpi ne, %6, %7 : vector<128x1xi32>
    %c0_i32_2 = arith.constant 0 : i32
    %9 = vector.broadcast %c0_i32_2 : i32 to vector<128x1xi32>
    %10 = arith.cmpi slt, %6, %9 : vector<128x1xi32>
    %c0_i32_3 = arith.constant 0 : i32
    %11 = arith.cmpi slt, %4, %c0_i32_3 : i32
    %12 = vector.broadcast %11 : i1 to vector<128x1xi1>
    %13 = vector.broadcast %12 : vector<128x1xi1> to vector<128x1xi1>
    %14 = arith.xori %10, %13 : vector<128x1xi1>
    %15 = arith.andi %14, %8 : vector<128x1xi1>
    %16 = vector.broadcast %4 : i32 to vector<128x1xi32>
    %17 = arith.addi %6, %16 : vector<128x1xi32>
    %18 = arith.select %15, %17, %6 : vector<128x1xi1>, vector<128x1xi32>
    %c0_i32_4 = arith.constant 0 : i32
    %19 = vector.broadcast %c0_i32_4 : i32 to vector<128x1xi32>
    %20 = arith.cmpi ne, %18, %19 : vector<128x1xi32>
    %c15_i32 = arith.constant 15 : i32
    %21 = vector.broadcast %c15_i32 : i32 to vector<128x1xi32>
    %22 = arith.cmpi ne, %18, %21 : vector<128x1xi32>
    %cst = arith.constant 0.000000e+00 : bf16
    %23 = vector.broadcast %cst : bf16 to vector<128x24xbf16>
    %24 = tpu.concatenate %1, %23 in 1 : vector<128x40xbf16>, vector<128x24xbf16> -> vector<128x64xbf16>
    %cst_5 = arith.constant 0.000000e+00 : bf16
    %25 = vector.broadcast %cst_5 : bf16 to vector<128x64xbf16>
    %26 = vector.extract_strided_slice %24 {offsets = [127, 0], sizes = [1, 64], strides = [1, 1]} : vector<128x64xbf16> to vector<1x64xbf16>
    %27 = vector.extract_strided_slice %24 {offsets = [0, 0], sizes = [127, 64], strides = [1, 1]} : vector<128x64xbf16> to vector<127x64xbf16>
    %28 = tpu.concatenate %26, %27 in 0 : vector<1x64xbf16>, vector<127x64xbf16> -> vector<128x64xbf16>
    %29 = vector.shape_cast %20 : vector<128x1xi1> to vector<128x1xi1>
    %30 = vector.broadcast %29 : vector<128x1xi1> to vector<128x64xi1>
    %31 = arith.select %30, %28, %25 : vector<128x64xi1>, vector<128x64xbf16>
    %32 = vector.extract_strided_slice %24 {offsets = [1, 0], sizes = [127, 64], strides = [1, 1]} : vector<128x64xbf16> to vector<127x64xbf16>
    %33 = vector.extract_strided_slice %24 {offsets = [0, 0], sizes = [1, 64], strides = [1, 1]} : vector<128x64xbf16> to vector<1x64xbf16>
    %34 = tpu.concatenate %32, %33 in 0 : vector<127x64xbf16>, vector<1x64xbf16> -> vector<128x64xbf16>
    %35 = vector.shape_cast %22 : vector<128x1xi1> to vector<128x1xi1>
    %36 = vector.broadcast %35 : vector<128x1xi1> to vector<128x64xi1>
    %37 = arith.select %36, %34, %25 : vector<128x64xi1>, vector<128x64xbf16>
    %38 = tpu.concatenate %31, %24, %37 in 1 : vector<128x64xbf16>, vector<128x64xbf16>, vector<128x64xbf16> -> vector<128x192xbf16>
    %c0_6 = arith.constant 0 : index
    %c0_7 = arith.constant 0 : index
    %39 = vector.load %arg2[%c0_6, %c0_7] : memref<192x64xbf16, #tpu.memory_space<vmem>>, vector<192x64xbf16>
    %cst_8 = arith.constant dense<0.000000e+00> : vector<128x64xf32>
    %40 = tpu.matmul %38, %39, %cst_8 {dimension_numbers = #tpu.dot_dimension_numbers<[1], [0], [0], [1], [0, 0, 1, 1], [], []>} : vector<128x192xbf16>, vector<192x64xbf16>, vector<128x64xf32> -> vector<128x64xf32>
    %c0_9 = arith.constant 0 : index
    %c0_10 = arith.constant 0 : index
    %41 = vector.load %arg3[%c0_9, %c0_10] : memref<1x64xf32, #tpu.memory_space<vmem>>, vector<1x64xf32>
    %42 = vector.broadcast %41 : vector<1x64xf32> to vector<128x64xf32>
    %43 = arith.addf %40, %42 : vector<128x64xf32>
    %cst_11 = arith.constant 0.000000e+00 : f32
    %44 = vector.broadcast %cst_11 : f32 to vector<128x64xf32>
    %45 = arith.maximumf %43, %44 : vector<128x64xf32>
    %46 = arith.truncf %45 : vector<128x64xf32> to vector<128x64xbf16>
    %cst_12 = arith.constant 0.000000e+00 : bf16
    %47 = vector.broadcast %cst_12 : bf16 to vector<128x64xbf16>
    %48 = vector.extract_strided_slice %46 {offsets = [127, 0], sizes = [1, 64], strides = [1, 1]} : vector<128x64xbf16> to vector<1x64xbf16>
    %49 = vector.extract_strided_slice %46 {offsets = [0, 0], sizes = [127, 64], strides = [1, 1]} : vector<128x64xbf16> to vector<127x64xbf16>
    %50 = tpu.concatenate %48, %49 in 0 : vector<1x64xbf16>, vector<127x64xbf16> -> vector<128x64xbf16>
    %51 = vector.shape_cast %20 : vector<128x1xi1> to vector<128x1xi1>
    %52 = vector.broadcast %51 : vector<128x1xi1> to vector<128x64xi1>
    %53 = arith.select %52, %50, %47 : vector<128x64xi1>, vector<128x64xbf16>
    %54 = vector.extract_strided_slice %46 {offsets = [1, 0], sizes = [127, 64], strides = [1, 1]} : vector<128x64xbf16> to vector<127x64xbf16>
    %55 = vector.extract_strided_slice %46 {offsets = [0, 0], sizes = [1, 64], strides = [1, 1]} : vector<128x64xbf16> to vector<1x64xbf16>
    %56 = tpu.concatenate %54, %55 in 0 : vector<127x64xbf16>, vector<1x64xbf16> -> vector<128x64xbf16>
    %57 = vector.shape_cast %22 : vector<128x1xi1> to vector<128x1xi1>
    %58 = vector.broadcast %57 : vector<128x1xi1> to vector<128x64xi1>
    %59 = arith.select %58, %56, %47 : vector<128x64xi1>, vector<128x64xbf16>
    %60 = tpu.concatenate %53, %46, %59 in 1 : vector<128x64xbf16>, vector<128x64xbf16>, vector<128x64xbf16> -> vector<128x192xbf16>
    %c0_13 = arith.constant 0 : index
    %c0_14 = arith.constant 0 : index
    %61 = vector.load %arg4[%c0_13, %c0_14] : memref<192x128xbf16, #tpu.memory_space<vmem>>, vector<192x128xbf16>
    %cst_15 = arith.constant dense<0.000000e+00> : vector<128x128xf32>
    %62 = tpu.matmul %60, %61, %cst_15 {dimension_numbers = #tpu.dot_dimension_numbers<[1], [0], [0], [1], [0, 0, 1, 1], [], []>} : vector<128x192xbf16>, vector<192x128xbf16>, vector<128x128xf32> -> vector<128x128xf32>
    %c0_16 = arith.constant 0 : index
    %c0_17 = arith.constant 0 : index
    %63 = vector.load %arg5[%c0_16, %c0_17] : memref<1x128xf32, #tpu.memory_space<vmem>>, vector<1x128xf32>
    %64 = vector.broadcast %63 : vector<1x128xf32> to vector<128x128xf32>
    %65 = arith.addf %62, %64 : vector<128x128xf32>
    %cst_18 = arith.constant 0.000000e+00 : f32
    %66 = vector.broadcast %cst_18 : f32 to vector<128x128xf32>
    %67 = arith.maximumf %65, %66 : vector<128x128xf32>
    %68 = vector.shape_cast %67 : vector<128x128xf32> to vector<8x16x128xf32>
    %cst_19 = arith.constant dense<0.000000e+00> : vector<8x128xf32>
    %69 = vector.multi_reduction <add>, %68, %cst_19 [1] : vector<8x16x128xf32> to vector<8x128xf32>
    %cst_20 = arith.constant 1.600000e+01 : f32
    %70 = vector.broadcast %cst_20 : f32 to vector<8x128xf32>
    %71 = arith.divf %69, %70 : vector<8x128xf32>
    %c0_21 = arith.constant 0 : index
    %c0_22 = arith.constant 0 : index
    %72 = vector.load %arg6[%c0_21, %c0_22] : memref<128x2xf32, #tpu.memory_space<vmem>>, vector<128x2xf32>
    %cst_23 = arith.constant dense<0.000000e+00> : vector<8x2xf32>
    %73 = tpu.matmul %71, %72, %cst_23 {dimension_numbers = #tpu.dot_dimension_numbers<[1], [0], [0], [1], [0, 0, 1, 1], [], []>} : vector<8x128xf32>, vector<128x2xf32>, vector<8x2xf32> -> vector<8x2xf32>
    %c0_24 = arith.constant 0 : index
    %c0_25 = arith.constant 0 : index
    %74 = vector.load %arg7[%c0_24, %c0_25] : memref<1x2xf32, #tpu.memory_space<vmem>>, vector<1x2xf32>
    %75 = vector.broadcast %74 : vector<1x2xf32> to vector<8x2xf32>
    %76 = arith.addf %73, %75 : vector<8x2xf32>
    %c0_26 = arith.constant 0 : index
    %c0_27 = arith.constant 0 : index
    %77 = vector.load %arg8[%c0_26, %c0_27] : memref<8x2xf32, #tpu.memory_space<vmem>>, vector<8x2xf32>
    tpu.vector_store %arg8[%c0_26, %c0_27], %76 {strides = array<i32>} : memref<8x2xf32, #tpu.memory_space<vmem>>, vector<8x2xf32>,
    return
  }
  func.func @transform_0(%arg0: i32) -> (i32, i32) {
    %c0_i32 = arith.constant 0 : i32
    %c0_i32_0 = arith.constant 0 : i32
    return %arg0, %c0_i32 : i32, i32
  }
  func.func @transform_1(%arg0: i32) -> (i32, i32) {
    %c0_i32 = arith.constant 0 : i32
    %c0_i32_0 = arith.constant 0 : i32
    %c0_i32_1 = arith.constant 0 : i32
    return %c0_i32, %c0_i32_0 : i32, i32
  }
  func.func @transform_2(%arg0: i32) -> (i32, i32) {
    %c0_i32 = arith.constant 0 : i32
    %c0_i32_0 = arith.constant 0 : i32
    %c0_i32_1 = arith.constant 0 : i32
    return %c0_i32, %c0_i32_0 : i32, i32
  }
  func.func @transform_3(%arg0: i32) -> (i32, i32) {
    %c0_i32 = arith.constant 0 : i32
    %c0_i32_0 = arith.constant 0 : i32
    %c0_i32_1 = arith.constant 0 : i32
    return %c0_i32, %c0_i32_0 : i32, i32
  }
  func.func @transform_4(%arg0: i32) -> (i32, i32) {
    %c0_i32 = arith.constant 0 : i32
    %c0_i32_0 = arith.constant 0 : i32
    %c0_i32_1 = arith.constant 0 : i32
    return %c0_i32, %c0_i32_0 : i32, i32
  }
  func.func @transform_5(%arg0: i32) -> (i32, i32) {
    %c0_i32 = arith.constant 0 : i32
    %c0_i32_0 = arith.constant 0 : i32
    %c0_i32_1 = arith.constant 0 : i32
    return %c0_i32, %c0_i32_0 : i32, i32
  }
  func.func @transform_6(%arg0: i32) -> (i32, i32) {
    %c0_i32 = arith.constant 0 : i32
    %c0_i32_0 = arith.constant 0 : i32
    %c0_i32_1 = arith.constant 0 : i32
    return %c0_i32, %c0_i32_0 : i32, i32
  }
  func.func @transform_7(%arg0: i32) -> (i32, i32) {
    %c0_i32 = arith.constant 0 : i32
    %c0_i32_0 = arith.constant 0 : i32
    return %arg0, %c0_i32 : i32, i32
  }
}

</mosaic_0001>

<bundles_post_ra>
// kernel: tpu_custom_call.1
= control target key start
LH: loop header
LB: loop body
LE: loop exit
PB: predicated region body
PF: predicated region fallthrough
CT: control target
= control target key end

     0   :  { %vm342_vm0 = vcmask 326656   ;;  %s1854_s29 = smov 64   ;;  %v61_v46 = vlaneseq  ;;  %vm1855_vm1 = vmmov 1   ;;  %vm2587_vm5 = vsmask.f32 7424  ;;  %s2571_s0 = inlined_call_operand.vmem [shape: f32[128,40], index: 0, kind: input, shape index: {}]   ;;  %s2572_s1 = inlined_call_operand.vmem [shape: bf16[192,64], index: 1, kind: input, shape index: {}]   ;;  %s2573_s2 = inlined_call_operand.vmem [shape: f32[1,64], index: 2, kind: input, shape index: {}]   ;;  %s2574_s3 = inlined_call_operand.vmem [shape: bf16[192,128], index: 3, kind: input, shape index: {}]   ;;  %s2575_s4 = inlined_call_operand.vmem [shape: f32[1,128], index: 4, kind: input, shape index: {}]   ;;  %s2576_s5 = inlined_call_operand.vmem [shape: f32[128,2], index: 5, kind: input, shape index: {}]   ;;  %s2577_s6 = inlined_call_operand.vmem [shape: f32[1,2], index: 6, kind: input, shape index: {}]   ;;  %s2578_s7 = inlined_call_operand.vmem [shape: f32[8,2], index: 7, kind: output, shape index: {}]  }
   0x1   :  { %v29_v0 = vld [vmem:[%s2571_s0] sm:$0xff]  ;;  %v30_v1 = vld [vmem:[%s2571_s0 + $0x8] sm:$0xff]  ;;  %v31_v2 = vld [vmem:[%s2571_s0 + $0x10] sm:$0xff]  ;;  %vm2579_vm8 = vcmask 523264   ;;  %vm2583_vm10 = vsmask.f32 256 }
   0x2   :  { %v45_v3 = vpack.c.bf16 %v29_v0, %v29_v0  ;;  %v46_v4 = vpack.c.bf16 %v30_v1, %v30_v1  ;;  %v32_v5 = vld [vmem:[%s2571_s0 + $0x18] sm:$0xff]  ;;  %v47_v6 = vpack.c.bf16 %v31_v2, %v31_v2  ;;  %v33_v7 = vld [vmem:[%s2571_s0 + $0x20] sm:$0xff]  ;;  %v34_v8 = vld [vmem:[%s2571_s0 + $0x28] sm:$0xff]  ;;  %v1996_v63 = vshrl.u32 %v61_v46, 7 }
   0x3   :  { %v48_v9 = vpack.c.bf16 %v32_v5, %v32_v5  ;;  %v49_v10 = vpack.c.bf16 %v33_v7, %v33_v7  ;;  %v50_v11 = vpack.c.bf16 %v34_v8, %v34_v8  ;;  %v35_v12 = vld [vmem:[%s2571_s0 + $0x30] sm:$0xff]  ;;  %v36_v13 = vld [vmem:[%s2571_s0 + $0x38] sm:$0xff]  ;;  %v37_v19 = vld [vmem:[%s2571_s0 + $0x40] sm:$0xff]  ;;  %vm425_vm11 = vcmask 1040384  }
   0x4   :  { %v1828_v14 = vld [vmem:[%s2572_s1 + $0x38] sm:$0xff]  ;;  %v318_v15 = vunpack.c.l.b16 %v45_v3  ;;  %v319_v16 = vunpack.c.l.b16 %v46_v4  ;;  %v320_v17 = vunpack.c.l.b16 %v47_v6  ;;  %v51_v18 = vpack.c.bf16 %v35_v12, %v35_v12  ;;  %v38_v20 = vld [vmem:[%s2571_s0 + $0x48] sm:$0xff]  ;;  %v1827_v25 = vld [vmem:[%s2572_s1 + $0x30] sm:$0xff] }
   0x5   :  { %v321_v21 = vunpack.c.l.b16 %v48_v9  ;;  %v322_v22 = vunpack.c.l.b16 %v49_v10  ;;  %v323_v23 = vunpack.c.l.b16 %v50_v11  ;;  %v52_v24 = vpack.c.bf16 %v36_v13, %v36_v13  ;;  %949 = vmatpush.bf16.msra.mxu0 %v1828_v14  ;;  %v1832_v26 = vld [vmem:[%s2572_s1 + $0x58] sm:$0xff]  ;;  %v1831_v34 = vld [vmem:[%s2572_s1 + $0x50] sm:$0xff]  ;;  %v1826_v41 = vld [vmem:[%s2572_s1 + $0x28] sm:$0xff] }
   0x6   :  { %v334_v27 = vpack.c.b16 %v319_v16, %v318_v15  ;;  %v53_v28 = vpack.c.bf16 %v37_v19, %v37_v19  ;;  %v54_v29 = vpack.c.bf16 %v38_v20, %v38_v20  ;;  %v324_v32 = vunpack.c.l.b16 %v51_v18  ;;  %1002 = vmatpush.bf16.msra.mxu1 %v1832_v26  ;;  %v41_v42 = vld [vmem:[%s2571_s0 + $0x60] sm:$0xff]  ;;  %v42_v43 = vld [vmem:[%s2571_s0 + $0x68] sm:$0xff]  ;;  %v39_v59 = vld [vmem:[%s2571_s0 + $0x50] sm:$0xff] }
   0x7   :  { %v335_v30 = vpack.c.b16 %v321_v21, %v320_v17  ;;  %v336_v31 = vpack.c.b16 %v323_v23, %v322_v22  ;;  %v325_v33 = vunpack.c.l.b16 %v52_v24  ;;  %v1830_v51 = vld [vmem:[%s2572_s1 + $0x48] sm:$0xff]  ;;  %v57_v54 = vpack.c.bf16 %v41_v42, %v41_v42  ;;  %v1825_v58 = vld [vmem:[%s2572_s1 + $0x20] sm:$0xff]  ;;  %v40_v60 = vld [vmem:[%s2571_s0 + $0x58] sm:$0xff] }
   0x8   :  { %v1941_v35 = vsel %vm342_vm0, %v334_v27, 0  ;;  %v326_v36 = vunpack.c.l.b16 %v53_v28  ;;  %v327_v37 = vunpack.c.l.b16 %v54_v29  ;;  %v58_v55 = vpack.c.bf16 %v42_v43, %v42_v43  ;;  %v1829_v1 = vld [vmem:[%s2572_s1 + $0x40] sm:$0xff]  ;;  %v1824_v6 = vld [vmem:[%s2572_s1 + $0x18] sm:$0xff]  ;;  %vm461_vm2 = vmpackc.low %vm1855_vm1, %vm1855_vm1 }
   0x9   :  { %776 = vrot.lane.b32.xlu0 %v1941_v35, %s1854_s29  ;;  %v365_v38 = vshrl.u32 %v1941_v35, 16  ;;  %v347_v39 = vsel %vm342_vm0, %v335_v30, 0  ;;  %v1948_v40 = vsel %vm342_vm0, %v336_v31, 0  ;;  %950 = vmatpush.bf16.msra.mxu0 %v1827_v25  ;;  %v368_v48 = vshll.u32 %v1941_v35, 16  ;;  %v43_v11 = vld [vmem:[%s2571_s0 + $0x70] sm:$0xff]  ;;  %v44_v12 = vld [vmem:[%s2571_s0 + $0x78] sm:$0xff]  ;;  %vm2083_vm12 = vmand %vm425_vm11, %vm2583_vm10 }
   0xa   :  { %v371_v44 = vshrl.u32 %v347_v39, 16  ;;  %v374_v45 = vshll.u32 %v347_v39, 16  ;;  %780 = vrot.lane.b32.xlu1 %v1948_v40, %s1854_s29  ;;  %v337_v49 = vpack.c.b16 %v325_v33, %v324_v32  ;;  %v338_v50 = vpack.c.b16 %v327_v37, %v326_v36  ;;  %1003 = vmatpush.bf16.msra.mxu1 %v1831_v34  ;;  %v1823_v19 = vld [vmem:[%s2572_s1 + $0x10] sm:$0xff]  ;;  %v1822_v30 = vld [vmem:[%s2572_s1 + $0x8] sm:$0xff] }
   0xb   :  { %v1963_v47 = vrot.slane %v365_v38, 7  ;;  %v330_v2 = vunpack.c.l.b16 %v57_v54  ;;  %v331_v3 = vunpack.c.l.b16 %v58_v55  ;;  %v55_v4 = vpack.c.bf16 %v39_v59, %v39_v59 }
   0xc   :  { %v1969_v52 = vrot.slane %v371_v44, 7  ;;  %v1971_v53 = vrot.slane %v374_v45, 1  ;;  %v1977_v57 = vsel %vm342_vm0, %v338_v50, 0  ;;  %v1999_v0 = vsel %vm342_vm0, %v337_v49, 0 }
   0xd   :  { %v1974_v56 = vor.u32 %v368_v48, %v1963_v47  ;;  %951 = vmatpush.bf16.msra.mxu0 %v1826_v41  ;;  %784 = vrot.lane.b32.xlu2 %v1977_v57, %s1854_s29  ;;  %v56_v5 = vpack.c.bf16 %v40_v60, %v40_v60  ;;  %v340_v7 = vpack.c.b16 %v331_v3, %v330_v2  ;;  %v328_v8 = vunpack.c.l.b16 %v55_v4  ;;  %v1821_v41 = vld [vmem:[%s2572_s1] sm:$0xff] }
   0xe   :  { %v1989_v61 = vor.u32 %v374_v45, %v1969_v52  ;;  %v1992_v62 = vor.u32 %v1971_v53, %v371_v44  ;;  %1004 = vmatpush.bf16.msra.mxu1 %v1830_v51  ;;  %v63_v10 = vadd.s32 8, %v1996_v63  ;;  %v1856_v15 = vmov 0  }
   0xf   :  { %v329_v9 = vunpack.c.l.b16 %v56_v5  ;;  %v477_v16 = vsel %vm461_vm2, 65537, %v1856_v15  ;;  %v2018_v17 = vrot.slane %v368_v48, 1  ;;  %v2021_v18 = vsel %vm342_vm0, %v340_v7, 0 }
  0x10   :  { %v89_v14 = vand.u32 15, %v63_v10  ;;  %v493_v20 = vunpack.c.l.b16 %v477_v16  ;;  %v59_v22 = vpack.c.bf16 %v43_v11, %v43_v11  ;;  %v60_v23 = vpack.c.bf16 %v44_v12, %v44_v12 }
  0x11   :  { %778 = vrot.lane.b32.xlu0 %v347_v39, %s1854_s29  ;;  %952 = vmatpush.bf16.msra.mxu0 %v1825_v58  ;;  %v339_v13 = vpack.c.b16 %v329_v9, %v328_v8  ;;  %v2032_v24 = vunpack.c.l.b16 %v1856_v15  ;;  %v582_v29 = vor.u32 %v2018_v17, %v365_v38  ;;  %v2046_v31 = vunpack.c.h.b16 %v1856_v15 }
  0x12   :  { %782 = vrot.lane.b32.xlu1 %v1999_v0, %s1854_s29  ;;  %1005 = vmatpush.bf16.msra.mxu1 %v1829_v1  ;;  %vm287_vm3 = vcmp.ne.s32.totalorder %v89_v14, 15  ;;  %v2034_v25 = vunpack.i.l.s16 %v493_v20  ;;  %v332_v27 = vunpack.c.l.b16 %v59_v22  ;;  %v333_v28 = vunpack.c.l.b16 %v60_v23  ;;  %v1843_v23 = vld [vmem:[%s2574_s3 + $0x50] sm:$0xff] }
  0x13   :  { %v2027_v21 = vsel %vm342_vm0, %v339_v13, 0  ;;  %vm649_vm4 = vmpackc.low %vm287_vm3, %vm287_vm3  ;;  %v584_v37 = vsel %vm2587_vm5, %v582_v29, %v1971_v53  ;;  %v381_v49 = vshll.u32 %v1948_v40, 16  ;;  %v2595_v51 = vmov 0 }
  0x14   :  { %v665_v26 = vsel %vm649_vm4, 65537, %v1856_v15  ;;  %v341_v33 = vpack.c.b16 %v333_v28, %v332_v27  ;;  %vm2050_vm6 = vcmp.ne.s32.totalorder %v2034_v25, %v2032_v24  ;;  %v2596_v51 = vsel %vm2083_vm12, 4294967295, %v2595_v51  ;;  %v1839_v27 = vld [vmem:[%s2574_s3 + $0x30] sm:$0xff] }
  0x15   :  { %953 = vmatpush.bf16.msra.mxu0 %v1824_v6  ;;  %786 = vrot.lane.b32.xlu2 %v2027_v21, %s1854_s29  ;;  %v681_v32 = vunpack.c.l.b16 %v665_v26  ;;  %v586_v50 = vrot.slane %v381_v49, 1  ;;  %v65_v53 = vadd.s32 24, %v1996_v63  ;;  %v82_v58 = vand.u32 15, %v1996_v63 }
  0x16   :  { %v359_v36 = vsel %vm342_vm0, %v341_v33, 0  ;;  %v378_v3 = vshrl.u32 %v1948_v40, 16  ;;  %v2100_v4 = vsel %vm2583_vm10, %v1963_v47, %v1989_v61  ;;  %v388_v5 = vshll.u32 %v1999_v0, 16 }
  0x17   :  { %v1694_v34 = vunpack.i.l.s16 %v681_v32  ;;  %v360_v38 = vshrl.u32 %v359_v36, 16  ;;  %v413_v39 = vshll.u32 %v359_v36, 16  ;;  %v103_v55 = vand.u32 15, %v65_v53 }
  0x18   :  { %v587_v59 = vsel %vm2587_vm5, %v1992_v62, %v586_v50  ;;  %vm270_vm15 = vcmp.ne.s32.totalorder %v82_v58, 0  ;;  %v64_v61 = vadd.s32 16, %v1996_v63  ;;  %v588_v7 = vor.u32 %v586_v50, %v378_v3 }
  0x19   :  { %788 = vrot.lane.b32.xlu0 %v2021_v18, %s1854_s29  ;;  %954 = vmatpush.bf16.msra.mxu0 %v1823_v19  ;;  %vm709_vm7 = vcmp.ne.s32.totalorder %v1694_v34, %v2046_v31  ;;  %v2068_v43 = vrot.slane %v360_v38, 7  ;;  %v2070_v44 = vrot.slane %v413_v39, 1  ;;  %vm289_vm13 = vcmp.ne.s32.totalorder %v103_v55, 15  ;;  %vm460_vm0 = vmpackc.low %vm270_vm15, %vm270_vm15 }
  0x1a   :  { %790 = vrot.lane.b32.xlu1 %v359_v36, %s1854_s29  ;;  %vm2064_vm9 = vmpackc.low %vm709_vm7, %vm2050_vm6  ;;  %v476_v47 = vsel %vm460_vm0, 65537, %v1856_v15  ;;  %v589_v8 = vrot.slane %v388_v5, 1  ;;  %v67_v9 = vadd.s32 40, %v1996_v63  ;;  %v96_v12 = vand.u32 15, %v64_v61 }
  0x1b   :  { %v760_v45 = vsel %vm2064_vm9, %v584_v37, 0  ;;  %v2076_v46 = vor.u32 %v413_v39, %v2068_v43  ;;  %v2079_v48 = vor.u32 %v2070_v44, %v360_v38  ;;  %v427_v54 = vsel %vm2083_vm12, %v2068_v43, %v1974_v56  ;;  %vm651_vm14 = vmpackc.low %vm289_vm13, %vm289_vm13 }
  0x1c   :  { %1757 = vmatmul.msk.bf16.vlgmr.msra.gmra.mxu1 %vm2579_vm8, %v760_v45  ;;  %v667_v60 = vsel %vm651_vm14, 65537, %v1856_v15  ;;  %v380_v56 = vrot.slane %v378_v3, 7  ;;  %v492_v10 = vunpack.c.l.b16 %v476_v47  ;;  %v117_v11 = vand.u32 15, %v67_v9  ;;  %v1835_v3 = vld [vmem:[%s2574_s3 + $0x10] sm:$0xff] }
  0x1d   :  { %955 = vmatpush.bf16.msra.mxu0 %v1822_v30  ;;  %v683_v1 = vunpack.c.l.b16 %v667_v60  ;;  %v590_v13 = vsel %vm2587_vm5, %v588_v7, %v589_v8  ;;  %vm272_vm7 = vcmp.ne.s32.totalorder %v96_v12, 0  ;;  %vm2125_vm13 = vcmp.ne.s32.totalorder %v2034_v25, %v2046_v31 }
  0x1e   :  { %v383_v6 = vor.u32 %v381_v49, %v380_v56  ;;  %vm291_vm3 = vcmp.ne.s32.totalorder %v117_v11, 15  ;;  %v1677_v16 = vunpack.i.l.s16 %v492_v10  ;;  %vm462_vm14 = vmpackc.low %vm272_vm7, %vm272_vm7  ;;  %v385_v26 = vshrl.u32 %v1999_v0, 16 }
  0x1f   :  { %v1696_v2 = vunpack.i.l.s16 %v683_v1  ;;  %vm653_vm4 = vmpackc.low %vm291_vm3, %vm291_vm3  ;;  %v2603_v25 = vmov 0  ;;  %v478_v29 = vsel %vm462_vm14, 65537, %v1856_v15  ;;  %v66_v32 = vadd.s32 32, %v1996_v63 }
  0x20   :  { %v2119_v14 = vsel %vm2583_vm10, %v1969_v52, %v383_v6  ;;  %v669_v19 = vsel %vm653_vm4, 65537, %v1856_v15  ;;  %vm520_vm11 = vcmp.ne.s32.totalorder %v1677_v16, %v2032_v24  ;;  %v395_v52 = vshll.u32 %v1977_v57, 16 }
  0x21   :  { %956 = vmatpush.bf16.msra.mxu0 %v1821_v41  ;;  %vm716_vm1 = vcmp.ne.s32.totalorder %v1696_v2, %v2046_v31  ;;  %v685_v20 = vunpack.c.l.b16 %v669_v19  ;;  %v387_v28 = vrot.slane %v385_v26, 7  ;;  %v591_v33 = vor.u32 %v589_v8, %v385_v26 }
  0x22   :  { %vm2106_vm2 = vmpackc.low %vm716_vm1, %vm2050_vm6  ;;  %v592_v30 = vrot.slane %v395_v52, 1  ;;  %v494_v36 = vunpack.c.l.b16 %v478_v29  ;;  %v69_v37 = vadd.s32 56, %v1996_v63  ;;  %v110_v45 = vand.u32 15, %v66_v32 }
  0x23   :  { %v761_v40 = vsel %vm2106_vm2, %v587_v59, 0  ;;  %v1698_v22 = vunpack.i.l.s16 %v685_v20  ;;  %vm2140_vm1 = vmpackc.low %vm2125_vm13, %vm520_vm11  ;;  %v390_v38 = vor.u32 %v388_v5, %v387_v28  ;;  %v392_v58 = vshrl.u32 %v1977_v57, 16 }
  0x24   :  { %v2604_v25 = vsel %vm2140_vm1, 4294967295, %v2603_v25  ;;  %v572_v34 = vsel %vm2140_vm1, %v427_v54, 0  ;;  %v131_v41 = vand.u32 15, %v69_v37  ;;  %v1679_v49 = vunpack.i.l.s16 %v494_v36 }
  0x25   :  { %vm723_vm15 = vcmp.ne.s32.totalorder %v1698_v22, %v2046_v31  ;;  %v593_v50 = vsel %vm2587_vm5, %v591_v33, %v592_v30  ;;  %v2155_v53 = vsel %vm2583_vm10, %v380_v56, %v390_v38  ;;  %vm274_vm7 = vcmp.ne.s32.totalorder %v110_v45, 0 }
  0x26   :  { %vm2134_vm0 = vmpackc.low %vm723_vm15, %vm2050_vm6  ;;  %vm293_vm3 = vcmp.ne.s32.totalorder %v131_v41, 15  ;;  %vm527_vm11 = vcmp.ne.s32.totalorder %v1679_v49, %v2032_v24  ;;  %v394_v60 = vrot.slane %v392_v58, 7  ;;  %v2605_v1 = vmov 0 }
  0x27   :  { %v762_v0 = vsel %vm2134_vm0, %v590_v13, 0  ;;  %vm655_vm4 = vmpackc.low %vm293_vm3, %vm293_vm3  ;;  %v402_v2 = vshll.u32 %v2027_v21, 16  ;;  %v68_v61 = vadd.s32 48, %v1996_v63  ;;  %v594_v6 = vor.u32 %v592_v30, %v392_v58 }
  0x28   :  { %v671_v54 = vsel %vm655_vm4, 65537, %v1856_v15  ;;  %vm464_vm14 = vmpackc.low %vm274_vm7, %vm274_vm7  ;;  %v397_v47 = vor.u32 %v395_v52, %v394_v60  ;;  %v71_v9 = vadd.s32 72, %v1996_v63  ;;  %v399_v26 = vshrl.u32 %v2027_v21, 16 }
  0x29   :  { %v687_v55 = vunpack.c.l.b16 %v671_v54  ;;  %vm2162_vm15 = vmpackc.low %vm2125_vm13, %vm527_vm11  ;;  %v480_v57 = vsel %vm464_vm14, 65537, %v1856_v15  ;;  %v595_v7 = vrot.slane %v402_v2, 1  ;;  %v124_v12 = vand.u32 15, %v68_v61 }
  0x2a   :  { %v2606_v1 = vsel %vm2162_vm15, 4294967295, %v2605_v1  ;;  %v496_v8 = vunpack.c.l.b16 %v480_v57  ;;  %v145_v11 = vand.u32 15, %v71_v9  ;;  %v409_v52 = vshll.u32 %v2021_v18, 16 }
  0x2b   :  { %v1700_v59 = vunpack.i.l.s16 %v687_v55  ;;  %v596_v16 = vsel %vm2587_vm5, %v594_v6, %v595_v7  ;;  %vm276_vm14 = vcmp.ne.s32.totalorder %v124_v12, 0  ;;  %v2609_v29 = vmov 0 }
  0x2c   :  { %1758 = vmatmul.msk.bf16.gmra.mxu1 %vm2579_vm8, %v761_v40  ;;  %v573_v40 = vsel %vm2162_vm15, %v2100_v4, 0  ;;  %v1681_v13 = vunpack.i.l.s16 %v496_v8  ;;  %vm295_vm7 = vcmp.ne.s32.totalorder %v145_v11, 15  ;;  %v2186_v4 = vsel %vm2583_vm10, %v387_v28, %v397_v47 }
  0x2d   :  { %vm730_vm3 = vcmp.ne.s32.totalorder %v1700_v59, %v2046_v31  ;;  %vm657_vm11 = vmpackc.low %vm295_vm7, %vm295_vm7  ;;  %v401_v28 = vrot.slane %v399_v26, 7  ;;  %v70_v36 = vadd.s32 64, %v1996_v63  ;;  %v597_v38 = vor.u32 %v595_v7, %v399_v26 }
  0x2e   :  { %vm2170_vm4 = vmpackc.low %vm730_vm3, %vm2050_vm6  ;;  %v673_v19 = vsel %vm657_vm11, 65537, %v1856_v15  ;;  %vm534_vm3 = vcmp.ne.s32.totalorder %v1681_v13, %v2032_v24  ;;  %v73_v41 = vadd.s32 88, %v1996_v63  ;;  %v2615_v57 = vmov 0 }
  0x2f   :  { %v763_v56 = vsel %vm2170_vm4, %v593_v50, 0  ;;  %v689_v20 = vunpack.c.l.b16 %v673_v19  ;;  %vm2194_vm15 = vmpackc.low %vm2125_vm13, %vm534_vm3  ;;  %v404_v37 = vor.u32 %v402_v2, %v401_v28  ;;  %v138_v49 = vand.u32 15, %v70_v36 }
  0x30   :  { %v2610_v29 = vsel %vm2194_vm15, 4294967295, %v2609_v29  ;;  %v574_v33 = vsel %vm2194_vm15, %v2119_v14, 0  ;;  %v159_v45 = vand.u32 15, %v73_v41  ;;  %v406_v2 = vshrl.u32 %v2021_v18, 16 }
  0x31   :  { %v1702_v22 = vunpack.i.l.s16 %v689_v20  ;;  %v2217_v14 = vsel %vm2583_vm10, %v394_v60, %v404_v37  ;;  %v72_v61 = vadd.s32 80, %v1996_v63  ;;  %v75_v9 = vadd.s32 104, %v1996_v63 }
  0x32   :  { %v408_v60 = vrot.slane %v406_v2, 7  ;;  %v2622_v26 = vmov 0 }
  0x33   :  { %vm737_vm7 = vcmp.ne.s32.totalorder %v1702_v22, %v2046_v31  ;;  %v173_v11 = vand.u32 15, %v75_v9  ;;  %v152_v12 = vand.u32 15, %v72_v61 }
  0x34   :  { %vm2201_vm11 = vmpackc.low %vm737_vm7, %vm2050_vm6  ;;  %v411_v6 = vor.u32 %v409_v52, %v408_v60 }
  0x35   :  { %v764_v30 = vsel %vm2201_vm11, %v596_v16, 0 }
  0x3c   :  { %1759 = vmatmul.msk.bf16.gmra.mxu1 %vm2579_vm8, %v762_v0  ;;  %v2611_v0 = vmov 0 }
  0x3d   :  { %v2612_v0 = vsel %vm2201_vm11, 4294967295, %v2611_v0 }
  0x4c   :  { %1760 = vmatmul.msk.bf16.gmra.mxu1 %vm2579_vm8, %v763_v56  ;;  %v2617_v56 = vmov 0 }
  0x7b   :  { %v777_v39 = vpop.permute.xlu0 %776 }
  0x7c   :  { %v795_v43 = vsel %vm2579_vm8, %v572_v34, %v777_v39  ;;  %v781_v32 = vpop.permute.xlu1 %780  ;;  %v598_v34 = vrot.slane %v409_v52, 1 }
  0x7d   :  { %957 = vmatmul.bf16.vlgmr.msra.gmra.mxu0 %v795_v43 }
  0x7e   :  { %v599_v54 = vsel %vm2587_vm5, %v597_v38, %v598_v34  ;;  %v600_v7 = vor.u32 %v598_v34, %v406_v2  ;;  %v77_v34 = vadd.s32 120, %v1996_v63 }
  0x80   :  { %v602_v16 = vsel %vm2587_vm5, %v600_v7, %v2070_v44  ;;  %v2624_v44 = vmov 0  ;;  %v187_v37 = vand.u32 15, %v77_v34 }
  0x83   :  { %v779_v5 = vpop.permute.xlu0 %778 }
  0x84   :  { %v799_v10 = vsel %vm2579_vm8, %v573_v40, %v779_v5  ;;  %vm466_vm8 = vmpackc.low %vm276_vm14, %vm276_vm14  ;;  %vm2613_vm14 = vcmask 523264   ;;  %v783_v40 = vpop.permute.xlu1 %782 }
  0x85   :  { %v482_v21 = vsel %vm466_vm8, 65537, %v1856_v15  ;;  %1761 = vmatmul.msk.bf16.gmra.mxu1 %vm2613_vm14, %v764_v30  ;;  %vm2614_vm3 = vmmov %vm2613_vm14  ;;  %vm297_vm8 = vcmp.ne.s32.totalorder %v159_v45, 15  ;;  %vm278_vm14 = vcmp.ne.s32.totalorder %v138_v49, 0 }
  0x86   :  { %v498_v39 = vunpack.c.l.b16 %v482_v21  ;;  %v803_v43 = vsel %vm2614_vm3, %v574_v33, %v781_v32  ;;  %vm659_vm7 = vmpackc.low %vm297_vm8, %vm297_vm8  ;;  %v785_v21 = vpop.permute.xlu2 %784  ;;  %v74_v32 = vadd.s32 96, %v1996_v63 }
  0x87   :  { %v675_v55 = vsel %vm659_vm7, 65537, %v1856_v15  ;;  %vm468_vm3 = vmpackc.low %vm278_vm14, %vm278_vm14  ;;  %vm299_vm7 = vcmp.ne.s32.totalorder %v173_v11, 15  ;;  %vm2621_vm14 = vsmask.f32 256 }
  0x88   :  { %v1683_v50 = vunpack.i.l.s16 %v498_v39  ;;  %v691_v58 = vunpack.c.l.b16 %v675_v55  ;;  %v484_v5 = vsel %vm468_vm3, 65537, %v1856_v15  ;;  %vm661_vm3 = vmpackc.low %vm299_vm7, %vm299_vm7  ;;  %v166_v38 = vand.u32 15, %v74_v32 }
  0x89   :  { %v500_v8 = vunpack.c.l.b16 %v484_v5  ;;  %v677_v19 = vsel %vm661_vm3, 65537, %v1856_v15  ;;  %vm2628_vm7 = vsmask.f32 256  ;;  %vm613_vm3 = vcmask 1047552  }
  0x8a   :  { %vm541_vm15 = vcmp.ne.s32.totalorder %v1683_v50, %v2032_v24  ;;  %v1704_v59 = vunpack.i.l.s16 %v691_v58  ;;  %v693_v20 = vunpack.c.l.b16 %v677_v19  ;;  %v416_v41 = vsel %vm2628_vm7, %v408_v60, %v2076_v46  ;;  %v1842_v19 = vld [vmem:[%s2574_s3 + $0x48] sm:$0xff] }
  0x8b   :  { %vm2224_vm1 = vmpackc.low %vm2125_vm13, %vm541_vm15  ;;  %vm2619_vm15 = vcmask 523264   ;;  %v1685_v13 = vunpack.i.l.s16 %v500_v8  ;;  %vm282_vm5 = vcmp.ne.s32.totalorder %v166_v38, 0 }
  0x8c   :  { %v2616_v57 = vsel %vm2224_vm1, 4294967295, %v2615_v57  ;;  %vm744_vm10 = vcmp.ne.s32.totalorder %v1704_v59, %v2046_v31  ;;  %v575_v47 = vsel %vm2224_vm1, %v2155_v53, 0  ;;  %v412_v53 = vsel %vm2621_vm14, %v401_v28, %v411_v6  ;;  %v791_v8 = vpop.permute.xlu1 %790 }
  0x8d   :  { %962 = vmatmul.bf16.gmra.mxu0 %v799_v10  ;;  %vm2231_vm8 = vmpackc.low %vm744_vm10, %vm2050_vm6  ;;  %vm548_vm1 = vcmp.ne.s32.totalorder %v1685_v13, %v2032_v24  ;;  %v1706_v22 = vunpack.i.l.s16 %v693_v20 }
  0x8e   :  { %v2618_v56 = vsel %vm2231_vm8, 4294967295, %v2617_v56  ;;  %v765_v18 = vsel %vm2231_vm8, %v599_v54, 0  ;;  %vm2620_vm10 = vmmov %vm2619_vm15  ;;  %v787_v58 = vpop.permute.xlu2 %786 }
  0x8f   :  { %v807_v10 = vsel %vm2620_vm10, %v575_v47, %v783_v40  ;;  %vm2252_vm10 = vmpackc.low %vm2125_vm13, %vm548_vm1  ;;  %vm751_vm8 = vcmp.ne.s32.totalorder %v1706_v22, %v2046_v31  ;;  %vm2626_vm1 = vcmask 523264   ;;  %v1841_v22 = vld [vmem:[%s2574_s3 + $0x40] sm:$0xff] }
  0x90   :  { %v2623_v26 = vsel %vm2252_vm10, 4294967295, %v2622_v26  ;;  %vm2259_vm14 = vmpackc.low %vm751_vm8, %vm2050_vm6  ;;  %v576_v30 = vsel %vm2252_vm10, %v2186_v4, 0  ;;  %vm2629_vm10 = vsmask.f32 7424 }
  0x91   :  { %v2625_v44 = vsel %vm2259_vm14, 4294967295, %v2624_v44  ;;  %v766_v28 = vsel %vm2259_vm14, %v602_v16, 0  ;;  %vm2627_vm8 = vmmov %vm2626_vm1 }
  0x92   :  { %v811_v36 = vsel %vm2627_vm8, %v576_v30, %v785_v21  ;;  %vm2278_vm14 = vmand %vm613_vm3, %vm2629_vm10 }
  0x93   :  { %vm472_vm8 = vmpackc.low %vm282_vm5, %vm282_vm5  ;;  %v615_v46 = vsel %vm2278_vm14, %v2079_v48, %v2018_v17  ;;  %vm2636_vm5 = vcmask 523264   ;;  %v76_v17 = vadd.s32 112, %v1996_v63 }
  0x94   :  { %v488_v54 = vsel %vm472_vm8, 65537, %v1856_v15  ;;  %vm2637_vm7 = vmmov %vm2636_vm5 }
  0x95   :  { %1762 = vmatmul.msk.bf16.gmra.mxu1 %vm2619_vm15, %v765_v18  ;;  %vm280_vm15 = vcmp.ne.s32.totalorder %v152_v12, 0  ;;  %v180_v35 = vand.u32 15, %v76_v17  ;;  %v789_v18 = vpop.permute.xlu0 %788  ;;  %vm2640_vm8 = vmmov %vm2636_vm5  ;;  %v1844_v12 = vld [vmem:[%s2574_s3 + $0x58] sm:$0xff] }
  0x96   :  { %vm470_vm12 = vmpackc.low %vm280_vm15, %vm280_vm15  ;;  %1476 = vmatpush.bf16.msra.mxu3 %v1844_v12 }
  0x97   :  { %v486_v52 = vsel %vm470_vm12, 65537, %v1856_v15  ;;  %vm301_vm12 = vcmp.ne.s32.totalorder %v187_v37, 15 }
  0x98   :  { %v502_v33 = vunpack.c.l.b16 %v486_v52  ;;  %vm663_vm15 = vmpackc.low %vm301_vm12, %vm301_vm12 }
  0x99   :  { %v679_v4 = vsel %vm663_vm15, 65537, %v1856_v15  ;;  %v1007_v6 = vpop.f32.mrf.mxu1 }
  0x9a   :  { %v1687_v39 = vunpack.i.l.s16 %v502_v33  ;;  %v695_v45 = vunpack.c.l.b16 %v679_v4  ;;  %1477 = vmatpush.bf16.msra.mxu3 %v1843_v23 }
  0x9c   :  { %v1708_v49 = vunpack.i.l.s16 %v695_v45 }
  0x9d   :  { %967 = vmatmul.bf16.gmra.mxu0 %v803_v43 }
  0x9e   :  { %vm758_vm12 = vcmp.ne.s32.totalorder %v1708_v49, %v2046_v31  ;;  %v504_v31 = vunpack.c.l.b16 %v488_v54  ;;  %1478 = vmatpush.bf16.msra.mxu3 %v1842_v19 }
  0x9f   :  { %vm2296_vm10 = vmpackc.low %vm758_vm12, %vm2050_vm6  ;;  %vm284_vm6 = vcmp.ne.s32.totalorder %v180_v35, 0 }
  0xa0   :  { %v767_v2 = vsel %vm2296_vm10, %v615_v46, 0  ;;  %v1689_v60 = vunpack.i.l.s16 %v504_v31  ;;  %vm474_vm15 = vmpackc.low %vm284_vm6, %vm284_vm6 }
  0xa1   :  { %v490_v5 = vsel %vm474_vm15, 65537, %v1856_v15  ;;  %v1009_v9 = vpop.f32.mrf.mxu1  ;;  %vm2644_vm6 = vmmov %vm2637_vm7 }
  0xa2   :  { %vm562_vm3 = vcmp.ne.s32.totalorder %v1689_v60, %v2032_v24  ;;  %v506_v40 = vunpack.c.l.b16 %v490_v5  ;;  %1479 = vmatpush.bf16.msra.mxu3 %v1841_v22  ;;  %vm2647_vm15 = vmmov %vm2644_vm6 }
  0xa4   :  { %v1691_v61 = vunpack.i.l.s16 %v506_v40 }
  0xa5   :  { %1763 = vmatmul.msk.bf16.gmra.mxu1 %vm2626_vm1, %v766_v28  ;;  %vm555_vm1 = vcmp.ne.s32.totalorder %v1687_v39, %v2032_v24 }
  0xa6   :  { %vm2284_vm11 = vmpackc.low %vm2125_vm13, %vm555_vm1  ;;  %vm569_vm12 = vcmp.ne.s32.totalorder %v1691_v61, %v2032_v24  ;;  %v2335_v24 = vld [vmem:[%s2573_s2] ss:$0 sm:$0xff] }
  0xa7   :  { %v577_v59 = vsel %vm2284_vm11, %v2217_v14, 0  ;;  %vm2311_vm1 = vmpackc.low %vm2125_vm13, %vm562_vm3  ;;  %vm2645_vm3 = vsmask.f32 256 }
  0xa8   :  { %v815_v48 = vsel %vm2637_vm7, %v577_v59, %v787_v58  ;;  %v578_v63 = vsel %vm2311_vm1, %v412_v53, 0 }
  0xa9   :  { %v819_v47 = vsel %vm2640_vm8, %v578_v63, %v789_v18  ;;  %v1012_v11 = vpop.f32.mrf.mxu1  ;;  %vm2648_vm8 = vmmov %vm2645_vm3 }
  0xad   :  { %972 = vmatmul.bf16.gmra.mxu0 %v807_v10 }
  0xb1   :  { %v1014_v53 = vpop.f32.mrf.mxu1 }
  0xb5   :  { %1764 = vmatmul.msk.bf16.gmra.mxu1 %vm2636_vm5, %v767_v2  ;;  %vm2322_vm5 = vmpackc.low %vm2125_vm13, %vm569_vm12  ;;  %vm2643_vm13 = vsmask.f32 7424 }
  0xb6   :  { %v579_v15 = vsel %vm2322_vm5, %v416_v41, 0  ;;  %vm2650_vm12 = vmmov %vm2644_vm6 }
  0xb7   :  { %v823_v10 = vsel %vm2637_vm7, %v579_v15, %v791_v8  ;;  %vm2651_vm7 = vmmov %vm2645_vm3 }
  0xb9   :  { %v1017_v32 = vpop.f32.mrf.mxu1 }
  0xbd   :  { %977 = vmatmul.bf16.gmra.mxu0 %v811_v36 }
  0xc1   :  { %v1019_v46 = vpop.f32.mrf.mxu1 }
  0xc9   :  { %v1022_v63 = vpop.f32.mrf.mxu1 }
  0xcd   :  { %982 = vmatmul.bf16.gmra.mxu0 %v815_v48 }
  0xd1   :  { %v1024_v22 = vpop.f32.mrf.mxu1 }
  0xdd   :  { %987 = vmatmul.bf16.gmra.mxu0 %v819_v47 }
  0xed   :  { %992 = vmatmul.bf16.gmra.mxu0 %v823_v10 }
  0xfa   :  { %v958_v13 = vpop.f32.mrf.mxu0 }
  0xfb   :  { %v959_v16 = vadd.f32 %v2335_v24, %v958_v13 }
  0xfd   :  { %v1008_v20 = vadd.f32 %v1007_v6, %v959_v16 }
  0xff   :  { %v1047_v28 = vmax.f32 %v1008_v20, 0.0 }
 0x101   :  { %v1063_v33 = vpack.c.bf16 %v1047_v28, %v1047_v28 }
 0x102   :  { %v960_v52 = vpop.f32.mrf.mxu0 }
 0x103   :  { %v961_v21 = vadd.f32 %v2335_v24, %v960_v52  ;;  %v2348_v38 = vunpack.c.l.b16 %v1063_v33 }
 0x105   :  { %v1010_v30 = vadd.f32 %v1009_v9, %v961_v21 }
 0x107   :  { %v1048_v34 = vmax.f32 %v1010_v30, 0.0 }
 0x109   :  { %v1064_v36 = vpack.c.bf16 %v1048_v34, %v1048_v34 }
 0x10a   :  { %v963_v37 = vpop.f32.mrf.mxu0 }
 0x10b   :  { %v1103_v39 = vunpack.c.l.b16 %v1064_v36  ;;  %v964_v41 = vadd.f32 %v2335_v24, %v963_v37 }
 0x10d   :  { %v1117_v4 = vpack.c.b16 %v1103_v39, %v2348_v38  ;;  %v1013_v45 = vadd.f32 %v1012_v11, %v964_v41 }
 0x10f   :  { %1251 = vrot.lane.b32.xlu2 %v1117_v4, %s1854_s29  ;;  %v1126_v49 = vshrl.u32 %v1117_v4, 16  ;;  %v1129_v54 = vshll.u32 %v1117_v4, 16  ;;  %v1049_v2 = vmax.f32 %v1013_v45, 0.0  ;;  %v1027_v4 = vpop.f32.mrf.mxu1 }
 0x111   :  { %v1128_v58 = vrot.slane %v1126_v49, 7  ;;  %v1065_v35 = vpack.c.bf16 %v1049_v2, %v1049_v2  ;;  %v1205_v8 = vrot.slane %v1129_v54, 1 }
 0x112   :  { %v965_v59 = vpop.f32.mrf.mxu0 }
 0x113   :  { %v966_v17 = vadd.f32 %v2335_v24, %v965_v59  ;;  %v2354_v31 = vor.u32 %v1129_v54, %v1128_v58  ;;  %v1104_v40 = vunpack.c.l.b16 %v1065_v35  ;;  %v1206_v11 = vor.u32 %v1205_v8, %v1126_v49 }
 0x115   :  { %v1015_v48 = vadd.f32 %v1014_v53, %v966_v17 }
 0x117   :  { %v1050_v60 = vmax.f32 %v1015_v48, 0.0 }
 0x119   :  { %v1066_v5 = vpack.c.bf16 %v1050_v60, %v1050_v60 }
 0x11a   :  { %v968_v18 = vpop.f32.mrf.mxu0 }
 0x11b   :  { %v1105_v47 = vunpack.c.l.b16 %v1066_v5  ;;  %v969_v61 = vadd.f32 %v2335_v24, %v968_v18 }
 0x11d   :  { %v1118_v6 = vpack.c.b16 %v1105_v47, %v1104_v40  ;;  %v1018_v15 = vadd.f32 %v1017_v32, %v969_v61  ;;  %v1029_v47 = vpop.f32.mrf.mxu1 }
 0x11f   :  { %1253 = vrot.lane.b32.xlu0 %v1118_v6, %s1854_s29  ;;  %v1133_v9 = vshrl.u32 %v1118_v6, 16  ;;  %v1136_v10 = vshll.u32 %v1118_v6, 16  ;;  %v1051_v16 = vmax.f32 %v1018_v15, 0.0 }
 0x121   :  { %v1207_v12 = vrot.slane %v1136_v10, 1  ;;  %v1135_v23 = vrot.slane %v1133_v9, 7  ;;  %v1067_v30 = vpack.c.bf16 %v1051_v16, %v1051_v16 }
 0x122   :  { %v970_v13 = vpop.f32.mrf.mxu0 }
 0x123   :  { %v971_v53 = vadd.f32 %v2335_v24, %v970_v13  ;;  %v1208_v19 = vsel %vm2643_vm13, %v1206_v11, %v1207_v12  ;;  %v1138_v52 = vor.u32 %v1136_v10, %v1135_v23  ;;  %v1106_v36 = vunpack.c.l.b16 %v1067_v30 }
 0x124   :  { %v1243_v20 = vsel %vm2064_vm9, %v1208_v19, 0  ;;  %vm2646_vm9 = vmmov %vm2643_vm13 }
 0x125   :  { %v1020_v28 = vadd.f32 %v1019_v46, %v971_v53  ;;  %1813 = vmatmul.msk.bf16.vlgmr.msra.gmra.mxu3 %vm2644_vm6, %v1243_v20  ;;  %v2364_v21 = vsel %vm2645_vm3, %v1128_v58, %v1138_v52  ;;  %v1209_v46 = vor.u32 %v1207_v12, %v1133_v9  ;;  %v1032_v19 = vpop.f32.mrf.mxu1  ;;  %vm2653_vm13 = vmmov %vm2644_vm6 }
 0x126   :  { %vm2654_vm6 = vmmov %vm2645_vm3  ;;  %vm2656_vm3 = vnez %v2612_v0 }
 0x127   :  { %v1052_v32 = vmax.f32 %v1020_v28, 0.0 }
 0x129   :  { %v1068_v33 = vpack.c.bf16 %v1052_v32, %v1052_v32 }
 0x12a   :  { %v973_v34 = vpop.f32.mrf.mxu0 }
 0x12b   :  { %v1107_v37 = vunpack.c.l.b16 %v1068_v33  ;;  %v974_v39 = vadd.f32 %v2335_v24, %v973_v34  ;;  %v1840_v33 = vld [vmem:[%s2574_s3 + $0x38] sm:$0xff] }
 0x12c   :  { %1423 = vmatpush.bf16.msra.mxu2 %v1840_v33 }
 0x12d   :  { %v1119_v41 = vpack.c.b16 %v1107_v37, %v1106_v36  ;;  %v1023_v42 = vadd.f32 %v1022_v63, %v974_v39 }
 0x12f   :  { %1255 = vrot.lane.b32.xlu1 %v1119_v41, %s1854_s29  ;;  %v1141_v45 = vshrl.u32 %v1119_v41, 16  ;;  %v1144_v49 = vshll.u32 %v1119_v41, 16  ;;  %v1053_v2 = vmax.f32 %v1023_v42, 0.0 }
 0x130   :  { %1424 = vmatpush.bf16.msra.mxu2 %v1839_v27 }
 0x131   :  { %v1210_v54 = vrot.slane %v1144_v49, 1  ;;  %v1143_v59 = vrot.slane %v1141_v45, 7  ;;  %v1069_v63 = vpack.c.bf16 %v1053_v2, %v1053_v2 }
 0x132   :  { %v975_v58 = vpop.f32.mrf.mxu0 }
 0x133   :  { %v976_v17 = vadd.f32 %v2335_v24, %v975_v58  ;;  %v1211_v48 = vsel %vm2646_vm9, %v1209_v46, %v1210_v54  ;;  %v1146_v60 = vor.u32 %v1144_v49, %v1143_v59  ;;  %v1108_v8 = vunpack.c.l.b16 %v1069_v63  ;;  %v1034_v49 = vpop.f32.mrf.mxu1 }
 0x134   :  { %v1244_v35 = vsel %vm2106_vm2, %v1211_v48, 0  ;;  %v1212_v13 = vor.u32 %v1210_v54, %v1141_v45  ;;  %vm2649_vm2 = vmmov %vm2646_vm9  ;;  %v1838_v54 = vld [vmem:[%s2574_s3 + $0x28] sm:$0xff] }
 0x135   :  { %v1025_v5 = vadd.f32 %v1024_v22, %v976_v17  ;;  %1814 = vmatmul.msk.bf16.gmra.mxu3 %vm2647_vm15, %v1244_v35  ;;  %v2374_v18 = vsel %vm2648_vm8, %v1135_v23, %v1146_v60  ;;  %1425 = vmatpush.bf16.msra.mxu2 %v1838_v54  ;;  %v1837_v35 = vld [vmem:[%s2574_s3 + $0x20] sm:$0xff]  ;;  %vm2657_vm9 = vmmov %vm2650_vm12 }
 0x136   :  { %vm2658_vm15 = vmmov %vm2654_vm6 }
 0x137   :  { %v1054_v40 = vmax.f32 %v1025_v5, 0.0 }
 0x139   :  { %v1070_v61 = vpack.c.bf16 %v1054_v40, %v1054_v40  ;;  %1426 = vmatpush.bf16.msra.mxu2 %v1837_v35 }
 0x13a   :  { %v978_v6 = vpop.f32.mrf.mxu0 }
 0x13b   :  { %v1109_v15 = vunpack.c.l.b16 %v1070_v61  ;;  %v979_v9 = vadd.f32 %v2335_v24, %v978_v6 }
 0x13d   :  { %v1120_v10 = vpack.c.b16 %v1109_v15, %v1108_v8  ;;  %v1028_v11 = vadd.f32 %v1027_v4, %v979_v9  ;;  %v1836_v15 = vld [vmem:[%s2574_s3 + $0x18] sm:$0xff]  ;;  %v1037_v9 = vpop.f32.mrf.mxu1 }
 0x13e   :  { %1427 = vmatpush.bf16.msra.mxu2 %v1836_v15 }
 0x13f   :  { %v1149_v62 = vshrl.u32 %v1120_v10, 16  ;;  %v1152_v12 = vshll.u32 %v1120_v10, 16  ;;  %1257 = vrot.lane.b32.xlu2 %v1120_v10, %s1854_s29  ;;  %v1055_v20 = vmax.f32 %v1028_v11, 0.0 }
 0x141   :  { %v1213_v16 = vrot.slane %v1152_v12, 1  ;;  %v1151_v53 = vrot.slane %v1149_v62, 7  ;;  %v1071_v36 = vpack.c.bf16 %v1055_v20, %v1055_v20 }
 0x142   :  { %v980_v23 = vpop.f32.mrf.mxu0  ;;  %1428 = vmatpush.bf16.msra.mxu2 %v1835_v3 }
 0x143   :  { %v981_v22 = vadd.f32 %v2335_v24, %v980_v23  ;;  %v1214_v52 = vsel %vm2649_vm2, %v1212_v13, %v1213_v16  ;;  %v1154_v30 = vor.u32 %v1152_v12, %v1151_v53  ;;  %v1110_v4 = vunpack.c.l.b16 %v1071_v36  ;;  %v1833_v36 = vld [vmem:[%s2574_s3] sm:$0xff] }
 0x144   :  { %v1245_v28 = vsel %vm2134_vm0, %v1214_v52, 0  ;;  %v1215_v17 = vor.u32 %v1213_v16, %v1149_v62  ;;  %vm2652_vm0 = vmmov %vm2649_vm2  ;;  %vm2660_vm2 = vnez %v2618_v56 }
 0x145   :  { %v1030_v32 = vadd.f32 %v1029_v47, %v981_v22  ;;  %1815 = vmatmul.msk.bf16.gmra.mxu3 %vm2650_vm12, %v1245_v28  ;;  %v2387_v34 = vsel %vm2651_vm7, %v1143_v59, %v1154_v30  ;;  %v1039_v30 = vpop.f32.mrf.mxu1  ;;  %vm2659_vm8 = vmmov %vm2652_vm0 }
 0x146   :  { %vm2661_vm12 = vmmov %vm2657_vm9 }
 0x147   :  { %v1056_v37 = vmax.f32 %v1030_v32, 0.0  ;;  %vm2662_vm7 = vmmov %vm2654_vm6 }
 0x149   :  { %v1072_v39 = vpack.c.bf16 %v1056_v37, %v1056_v37 }
 0x14a   :  { %v983_v41 = vpop.f32.mrf.mxu0 }
 0x14b   :  { %v1111_v42 = vunpack.c.l.b16 %v1072_v39  ;;  %v984_v45 = vadd.f32 %v2335_v24, %v983_v41 }
 0x14d   :  { %v1121_v46 = vpack.c.b16 %v1111_v42, %v1110_v4  ;;  %v1033_v59 = vadd.f32 %v1032_v19, %v984_v45 }
 0x14f   :  { %v1157_v58 = vshrl.u32 %v1121_v46, 16  ;;  %v1160_v2 = vshll.u32 %v1121_v46, 16  ;;  %1259 = vrot.lane.b32.xlu0 %v1121_v46, %s1854_s29  ;;  %v1057_v63 = vmax.f32 %v1033_v59, 0.0 }
 0x151   :  { %v1216_v48 = vrot.slane %v1160_v2, 1  ;;  %v1159_v60 = vrot.slane %v1157_v58, 7  ;;  %v1073_v11 = vpack.c.bf16 %v1057_v63, %v1057_v63 }
 0x152   :  { %v985_v5 = vpop.f32.mrf.mxu0 }
 0x153   :  { %v986_v40 = vadd.f32 %v2335_v24, %v985_v5  ;;  %v1217_v47 = vsel %vm2652_vm0, %v1215_v17, %v1216_v48  ;;  %v1162_v6 = vor.u32 %v1160_v2, %v1159_v60  ;;  %v1112_v16 = vunpack.c.l.b16 %v1073_v11  ;;  %v1042_v2 = vpop.f32.mrf.mxu1 }
 0x154   :  { %v1246_v61 = vsel %vm2170_vm4, %v1217_v47, 0  ;;  %v1218_v32 = vor.u32 %v1216_v48, %v1157_v58  ;;  %vm2655_vm4 = vmmov %vm2652_vm0 }
 0x155   :  { %v1035_v8 = vadd.f32 %v1034_v49, %v986_v40  ;;  %1816 = vmatmul.msk.bf16.gmra.mxu3 %vm2653_vm13, %v1246_v61  ;;  %v2409_v10 = vsel %vm2654_vm6, %v1151_v53, %v1162_v6  ;;  %v1834_v53 = vld [vmem:[%s2574_s3 + $0x8] sm:$0xff]  ;;  %vm2663_vm13 = vnez %v2596_v51  ;;  %vm2664_vm6 = vnez %v2625_v44 }
 0x156   :  { %1429 = vmatpush.bf16.msra.mxu2 %v1834_v53 }
 0x157   :  { %v1058_v62 = vmax.f32 %v1035_v8, 0.0 }
 0x159   :  { %v1074_v12 = vpack.c.bf16 %v1058_v62, %v1058_v62 }
 0x15a   :  { %v988_v13 = vpop.f32.mrf.mxu0  ;;  %1430 = vmatpush.bf16.msra.mxu2 %v1833_v36 }
 0x15b   :  { %v1113_v23 = vunpack.c.l.b16 %v1074_v12  ;;  %v989_v19 = vadd.f32 %v2335_v24, %v988_v13  ;;  %v1044_v62 = vpop.f32.mrf.mxu1 }
 0x15d   :  { %v1122_v20 = vpack.c.b16 %v1113_v23, %v1112_v16  ;;  %v1038_v22 = vadd.f32 %v1037_v9, %v989_v19 }
 0x15f   :  { %v1165_v52 = vshrl.u32 %v1122_v20, 16  ;;  %v1168_v28 = vshll.u32 %v1122_v20, 16  ;;  %1261 = vrot.lane.b32.xlu1 %v1122_v20, %s1854_s29  ;;  %v1059_v27 = vmax.f32 %v1038_v22, 0.0 }
 0x161   :  { %v1219_v33 = vrot.slane %v1168_v28, 1  ;;  %v1167_v37 = vrot.slane %v1165_v52, 7  ;;  %v1075_v54 = vpack.c.bf16 %v1059_v27, %v1059_v27 }
 0x162   :  { %v990_v39 = vpop.f32.mrf.mxu0 }
 0x163   :  { %v991_v41 = vadd.f32 %v2335_v24, %v990_v39  ;;  %v1220_v4 = vsel %vm2655_vm4, %v1218_v32, %v1219_v33  ;;  %v1170_v45 = vor.u32 %v1168_v28, %v1167_v37  ;;  %v1114_v48 = vunpack.c.l.b16 %v1075_v54 }
 0x164   :  { %v1247_v42 = vsel %vm2656_vm3, %v1220_v4, 0  ;;  %v1221_v61 = vor.u32 %v1219_v33, %v1165_v52  ;;  %vm2665_vm4 = vnez %v2604_v25  ;;  %vm2666_vm3 = vmmov %vm2657_vm9 }
 0x165   :  { %v1040_v49 = vadd.f32 %v1039_v30, %v991_v41  ;;  %1817 = vmatmul.msk.bf16.gmra.mxu3 %vm2657_vm9, %v1247_v42  ;;  %v2428_v46 = vsel %vm2658_vm15, %v1159_v60, %v1170_v45  ;;  %vm2667_vm9 = vmmov %vm2666_vm3 }
 0x166   :  { %vm2668_vm15 = vmmov %vm2662_vm7 }
 0x167   :  { %v1060_v59 = vmax.f32 %v1040_v49, 0.0 }
 0x169   :  { %v1076_v58 = vpack.c.bf16 %v1060_v59, %v1060_v59  ;;  %v1252_v4 = vpop.permute.xlu2 %1251  ;;  %v1236_v59 = vpack.c.b16 %v2348_v38, %v2348_v38 }
 0x16a   :  { %v993_v17 = vpop.f32.mrf.mxu0 }
 0x16b   :  { %v1115_v35 = vunpack.c.l.b16 %v1076_v58  ;;  %v994_v5 = vadd.f32 %v2335_v24, %v993_v17  ;;  %v1238_v51 = vshll.u32 %v1236_v59, 16 }
 0x16d   :  { %v1123_v63 = vpack.c.b16 %v1115_v35, %v1114_v48  ;;  %v1043_v40 = vadd.f32 %v1042_v2, %v994_v5  ;;  %v1240_v58 = vrot.slane %v1238_v51, 1 }
 0x16f   :  { %v1173_v0 = vshrl.u32 %v1123_v63, 16  ;;  %v1176_v47 = vshll.u32 %v1123_v63, 16  ;;  %1263 = vrot.lane.b32.xlu2 %v1123_v63, %s1854_s29  ;;  %v1061_v15 = vmax.f32 %v1043_v40, 0.0 }
 0x171   :  { %v1222_v6 = vrot.slane %v1176_v47, 1  ;;  %v1175_v8 = vrot.slane %v1173_v0, 7  ;;  %v1077_v23 = vpack.c.bf16 %v1061_v15, %v1061_v15 }
 0x172   :  { %v995_v60 = vpop.f32.mrf.mxu0 }
 0x173   :  { %v996_v9 = vadd.f32 %v2335_v24, %v995_v60  ;;  %v1223_v11 = vsel %vm2659_vm8, %v1221_v61, %v1222_v6  ;;  %v1178_v3 = vor.u32 %v1176_v47, %v1175_v8  ;;  %v1116_v53 = vunpack.c.l.b16 %v1077_v23  ;;  %v2489_v60 = vld [vmem:[%s2575_s4] ss:$0 sm:$0xff]  ;;  %v1622_v23 = vld [vmem:[%s2576_s5 + $0x70] sm:$0xff] }
 0x174   :  { %v1248_v12 = vsel %vm2660_vm2, %v1223_v11, 0  ;;  %v1224_v33 = vor.u32 %v1222_v6, %v1173_v0  ;;  %vm2669_vm8 = vnez %v2606_v1  ;;  %vm2670_vm2 = vmmov %vm2666_vm3 }
 0x175   :  { %v1045_v13 = vadd.f32 %v1044_v62, %v996_v9  ;;  %1818 = vmatmul.msk.bf16.gmra.mxu3 %vm2661_vm12, %v1248_v12  ;;  %v1179_v16 = vsel %vm2662_vm7, %v1167_v37, %v1178_v3  ;;  %v1198_v17 = vsel %vm2669_vm8, %v2364_v21, 0  ;;  %vm2671_vm12 = vmmov %vm2670_vm2  ;;  %vm2672_vm7 = vnez %v2610_v29 }
 0x176   :  { %v1199_v35 = vsel %vm2672_vm7, %v2374_v18, 0  ;;  %v1202_v18 = vsel %vm2284_vm11, %v2428_v46, 0  ;;  %vm1642_vm8 = vcmask 1044484   ;;  %vm1648_vm7 = vcmask 1047559  }
 0x177   :  { %v1062_v19 = vmax.f32 %v1045_v13, 0.0 }
 0x179   :  { %v1078_v20 = vpack.c.bf16 %v1062_v19, %v1062_v19  ;;  %v1621_v19 = vld [vmem:[%s2576_s5 + $0x68] sm:$0xff] }
 0x17b   :  { %v1080_v22 = vunpack.c.l.b16 %v1078_v20 }
 0x17d   :  { %v1081_v52 = vpack.c.b16 %v1080_v22, %v1080_v22  ;;  %v1124_v28 = vpack.c.b16 %v1080_v22, %v1116_v53  ;;  %v1857_v22 = vmov 16.0  }
 0x17e   :  { %1852 = vrcp.f32 %v1857_v22 }
 0x17f   :  { %v1083_v24 = vshrl.u32 %v1081_v52, 16  ;;  %v1181_v30 = vshrl.u32 %v1124_v28, 16  ;;  %v1184_v32 = vshll.u32 %v1124_v28, 16  ;;  %1265 = vrot.lane.b32.xlu0 %v1124_v28, %s1854_s29 }
 0x181   :  { %v1085_v56 = vrot.slane %v1083_v24, 3  ;;  %v1225_v36 = vrot.slane %v1184_v32, 1  ;;  %v1183_v39 = vrot.slane %v1181_v30, 7 }
 0x183   :  { %v1226_v27 = vsel %vm2652_vm0, %v1224_v33, %v1225_v36  ;;  %v1196_v37 = vsel %vm2663_vm13, %v1085_v56, %v2354_v31  ;;  %v1186_v41 = vor.u32 %v1184_v32, %v1183_v39  ;;  %v1227_v31 = vor.u32 %v1225_v36, %v1181_v30  ;;  %vm2673_vm0 = vmmov %vm2670_vm2 }
 0x184   :  { %v1249_v42 = vsel %vm2664_vm6, %v1226_v27, 0  ;;  %v1197_v45 = vsel %vm2665_vm4, %v1196_v37, 0  ;;  %vm2676_vm13 = vnez %v2623_v26  ;;  %vm2677_vm6 = vmmov %vm2673_vm0  ;;  %v1853_v30 = vpop.eup %1852 }
 0x185   :  { %1819 = vmatmul.msk.bf16.gmra.mxu3 %vm2666_vm3, %v1249_v42  ;;  %v1269_v49 = vsel %vm2667_vm9, %v1197_v45, %v1252_v4  ;;  %v1187_v54 = vsel %vm2668_vm15, %v1175_v8, %v1186_v41  ;;  %v1242_v44 = vsel %vm2278_vm14, %v1227_v31, %v1240_v58  ;;  %vm2674_vm14 = vnez %v2616_v57  ;;  %vm2678_vm4 = vmmov %vm2673_vm0  ;;  %v1623_v8 = vld [vmem:[%s2576_s5 + $0x78] sm:$0xff]  ;;  %v1620_v42 = vld [vmem:[%s2576_s5 + $0x60] sm:$0xff] }
 0x186   :  { %1431 = vmatmul.bf16.vlgmr.msra.gmra.mxu2 %v1269_v49  ;;  %v1250_v25 = vsel %vm2296_vm10, %v1242_v44, 0  ;;  %v1200_v55 = vsel %vm2674_vm14, %v2387_v34, 0  ;;  %vm2675_vm10 = vmmov %vm2673_vm0  ;;  %v1201_v63 = vsel %vm2676_vm13, %v2409_v10, 0  ;;  %v1203_v34 = vsel %vm2311_vm1, %v1179_v16, 0  ;;  %1651 = vmatpush.msrb.mxu1 %v1623_v8  ;;  %v1619_v45 = vld [vmem:[%s2576_s5 + $0x58] sm:$0xff] }
 0x187   :  { %vm2679_vm3 = vmmov %vm2673_vm0  ;;  %v1204_v61 = vsel %vm2322_vm5, %v1187_v54, 0  ;;  %v1594_v39 = vmul.f32 16.0, %v1853_v30  ;;  %vm1598_vm11 = vweird.f32 %v1853_v30  ;;  %vm1636_vm1 = vcmask 1041409  }
 0x188   :  { %vm2680_vm9 = vmmov %vm2673_vm0  ;;  %1652 = vmatpush.msrb.mxu1 %v1622_v23  ;;  %v1616_v23 = vld [vmem:[%s2576_s5 + $0x40] sm:$0xff]  ;;  %vm1638_vm5 = vcmask 1042434   ;;  %vm1640_vm15 = vcmask 1043459  }
 0x189   :  { %v1595_v49 = vsub.f32 1.0, %v1594_v39 }
 0x18a   :  { %1653 = vmatpush.msrb.mxu1 %v1621_v19  ;;  %v1615_v19 = vld [vmem:[%s2576_s5 + $0x38] sm:$0xff] }
 0x18b   :  { %v1596_v44 = vmul.f32 %v1853_v30, %v1595_v49 }
 0x18c   :  { %1654 = vmatpush.msrb.mxu1 %v1620_v42  ;;  %v1613_v42 = vld [vmem:[%s2576_s5 + $0x28] sm:$0xff] }
 0x18e   :  { %1655 = vmatpush.msrb.mxu1 %v1619_v45 }
 0x191   :  { %v1254_v2 = vpop.permute.xlu0 %1253 }
 0x192   :  { %v1273_v48 = vsel %vm2671_vm12, %v1198_v17, %v1254_v2  ;;  %vm1646_vm12 = vcmask 1046534  }
 0x195   :  { %1820 = vmatmul.msk.bf16.gmra.mxu3 %vm2670_vm2, %v1250_v25  ;;  %vm1644_vm2 = vcmask 1045509  }
 0x196   :  { %1436 = vmatmul.bf16.gmra.mxu2 %v1273_v48 }
 0x199   :  { %v1258_v5 = vpop.permute.xlu2 %1257 }
 0x19a   :  { %v1281_v1 = vsel %vm2675_vm10, %v1200_v55, %v1258_v5 }
 0x1a1   :  { %v1256_v38 = vpop.permute.xlu1 %1255 }
 0x1a2   :  { %v1277_v43 = vsel %vm2673_vm0, %v1199_v35, %v1256_v38  ;;  %v1597_v38 = vadd.f32 %v1853_v30, %v1596_v44  ;;  %vm1671_vm0 = vcmask 15360  }
 0x1a6   :  { %1441 = vmatmul.bf16.gmra.mxu2 %v1277_v43 }
 0x1a8   :  { %v1481_v26 = vpop.f32.mrf.mxu3 }
 0x1b0   :  { %v1483_v50 = vpop.f32.mrf.mxu3 }
 0x1b6   :  { %1446 = vmatmul.bf16.gmra.mxu2 %v1281_v1 }
 0x1b8   :  { %v1486_v46 = vpop.f32.mrf.mxu3 }
 0x1c0   :  { %v1488_v15 = vpop.f32.mrf.mxu3 }
 0x1c1   :  { %v1260_v21 = vpop.permute.xlu0 %1259 }
 0x1c2   :  { %v1285_v40 = vsel %vm2677_vm6, %v1201_v63, %v1260_v21 }
 0x1c6   :  { %1451 = vmatmul.bf16.gmra.mxu2 %v1285_v40  ;;  %v2509_v40 = vsel %vm1598_vm11, %v1853_v30, %v1597_v38 }
 0x1c8   :  { %v1491_v3 = vpop.f32.mrf.mxu3 }
 0x1c9   :  { %v1264_v57 = vpop.permute.xlu2 %1263 }
 0x1ca   :  { %v1293_v47 = vsel %vm2679_vm3, %v1203_v34, %v1264_v57 }
 0x1d0   :  { %v1493_v24 = vpop.f32.mrf.mxu3 }
 0x1d1   :  { %v1262_v29 = vpop.permute.xlu1 %1261 }
 0x1d2   :  { %v1289_v0 = vsel %vm2678_vm4, %v1202_v18, %v1262_v29 }
 0x1d6   :  { %1456 = vmatmul.bf16.gmra.mxu2 %v1289_v0 }
 0x1d8   :  { %v1496_v59 = vpop.f32.mrf.mxu3 }
 0x1e0   :  { %v1498_v63 = vpop.f32.mrf.mxu3 }
 0x1e6   :  { %1461 = vmatmul.bf16.gmra.mxu2 %v1293_v47 }
 0x1f1   :  { %v1266_v10 = vpop.permute.xlu0 %1265 }
 0x1f2   :  { %v1297_v6 = vsel %vm2680_vm9, %v1204_v61, %v1266_v10  ;;  %v1617_v10 = vld [vmem:[%s2576_s5 + $0x48] sm:$0xff] }
 0x1f6   :  { %1466 = vmatmul.bf16.gmra.mxu2 %v1297_v6 }
 0x209   :  { %v1432_v14 = vpop.f32.mrf.mxu2 }
 0x20a   :  { %v1433_v7 = vadd.f32 %v2489_v60, %v1432_v14 }
 0x20c   :  { %v1482_v11 = vadd.f32 %v1481_v26, %v1433_v7  ;;  %v1618_v26 = vld [vmem:[%s2576_s5 + $0x50] sm:$0xff]  ;;  %v1501_v7 = vpop.f32.mrf.mxu3 }
 0x20d   :  { %1656 = vmatpush.msrb.mxu1 %v1618_v26  ;;  %v1608_v26 = vld [vmem:[%s2576_s5] sm:$0xff] }
 0x20e   :  { %v1521_v13 = vmax.f32 %v1482_v11, 0.0 }
 0x20f   :  { %1657 = vmatpush.msrb.mxu1 %v1617_v10 }
 0x211   :  { %v1434_v9 = vpop.f32.mrf.mxu2  ;;  %1658 = vmatpush.msrb.mxu1 %v1616_v23 }
 0x212   :  { %v1435_v62 = vadd.f32 %v2489_v60, %v1434_v9 }
 0x213   :  { %1659 = vmatpush.msrb.mxu1 %v1615_v19 }
 0x214   :  { %v1484_v12 = vadd.f32 %v1483_v50, %v1435_v62 }
 0x216   :  { %v1522_v16 = vmax.f32 %v1484_v12, 0.0 }
 0x218   :  { %v1537_v20 = vadd.f32 %v1522_v16, %v1521_v13 }
 0x219   :  { %v1437_v53 = vpop.f32.mrf.mxu2 }
 0x21a   :  { %v1538_v52 = vrot.slane %v1537_v20, 4  ;;  %v1438_v28 = vadd.f32 %v2489_v60, %v1437_v53 }
 0x21c   :  { %v1539_v56 = vadd.f32 %v1538_v52, %v1537_v20  ;;  %v1487_v33 = vadd.f32 %v1486_v46, %v1438_v28  ;;  %v1503_v52 = vpop.f32.mrf.mxu3 }
 0x21e   :  { %v1540_v37 = vrot.slane %v1539_v56, 2  ;;  %v1523_v41 = vmax.f32 %v1487_v33, 0.0 }
 0x220   :  { %v1541_v31 = vadd.f32 %v1540_v37, %v1539_v56 }
 0x221   :  { %v1439_v32 = vpop.f32.mrf.mxu2 }
 0x222   :  { %v1440_v36 = vadd.f32 %v2489_v60, %v1439_v32  ;;  %v1542_v25 = vrot.slane %v1541_v31, 1 }
 0x224   :  { %v1489_v27 = vadd.f32 %v1488_v15, %v1440_v36  ;;  %v1543_v5 = vadd.f32 %v1542_v25, %v1541_v31  ;;  %v1506_v39 = vpop.f32.mrf.mxu3  ;;  %v1612_v31 = vld [vmem:[%s2576_s5 + $0x20] sm:$0xff] }
 0x226   :  { %v1524_v4 = vmax.f32 %v1489_v27, 0.0  ;;  %v1600_v0 = vmul.f32 %v2509_v40, %v1543_v5 }
 0x228   :  { %v1544_v54 = vadd.f32 %v1524_v4, %v1523_v41  ;;  %v1614_v4 = vld [vmem:[%s2576_s5 + $0x30] sm:$0xff] }
 0x229   :  { %v1442_v51 = vpop.f32.mrf.mxu2  ;;  %1660 = vmatpush.msrb.mxu1 %v1614_v4 }
 0x22a   :  { %v1545_v58 = vrot.slane %v1544_v54, 4  ;;  %v1443_v48 = vadd.f32 %v2489_v60, %v1442_v51 }
 0x22b   :  { %1661 = vmatpush.msrb.mxu1 %v1613_v42 }
 0x22c   :  { %v1546_v2 = vadd.f32 %v1545_v58, %v1544_v54  ;;  %v1492_v1 = vadd.f32 %v1491_v3, %v1443_v48  ;;  %v1611_v58 = vld [vmem:[%s2576_s5 + $0x18] sm:$0xff] }
 0x22d   :  { %1662 = vmatpush.msrb.mxu1 %v1612_v31 }
 0x22e   :  { %v1547_v17 = vrot.slane %v1546_v2, 2  ;;  %v1525_v34 = vmax.f32 %v1492_v1, 0.0 }
 0x22f   :  { %1663 = vmatpush.msrb.mxu1 %v1611_v58 }
 0x230   :  { %v1548_v35 = vadd.f32 %v1547_v17, %v1546_v2 }
 0x231   :  { %v1444_v43 = vpop.f32.mrf.mxu2 }
 0x232   :  { %v1549_v55 = vrot.slane %v1548_v35, 1  ;;  %v1445_v21 = vadd.f32 %v2489_v60, %v1444_v43 }
 0x234   :  { %v1550_v29 = vadd.f32 %v1549_v55, %v1548_v35  ;;  %v1494_v18 = vadd.f32 %v1493_v24, %v1445_v21 }
 0x236   :  { %v1601_v57 = vmul.f32 %v2509_v40, %v1550_v29  ;;  %v1526_v47 = vmax.f32 %v1494_v18, 0.0  ;;  %v1609_v29 = vld [vmem:[%s2576_s5 + $0x8] sm:$0xff] }
 0x238   :  { %v1551_v61 = vadd.f32 %v1526_v47, %v1525_v34  ;;  %v1637_v6 = vsel %vm1636_vm1, %v1601_v57, %v1600_v0 }
 0x239   :  { %v1447_v50 = vpop.f32.mrf.mxu2 }
 0x23a   :  { %v1552_v46 = vrot.slane %v1551_v61, 4  ;;  %v1448_v8 = vadd.f32 %v2489_v60, %v1447_v50 }
 0x23c   :  { %v1553_v14 = vadd.f32 %v1552_v46, %v1551_v61  ;;  %v1497_v15 = vadd.f32 %v1496_v59, %v1448_v8  ;;  %v1508_v59 = vpop.f32.mrf.mxu3 }
 0x23e   :  { %v1554_v9 = vrot.slane %v1553_v14, 2  ;;  %v1527_v53 = vmax.f32 %v1497_v15, 0.0 }
 0x240   :  { %v1555_v11 = vadd.f32 %v1554_v9, %v1553_v14 }
 0x241   :  { %v1449_v62 = vpop.f32.mrf.mxu2 }
 0x242   :  { %v1556_v12 = vrot.slane %v1555_v11, 1  ;;  %v1450_v3 = vadd.f32 %v2489_v60, %v1449_v62 }
 0x244   :  { %v1557_v13 = vadd.f32 %v1556_v12, %v1555_v11  ;;  %v1499_v16 = vadd.f32 %v1498_v63, %v1450_v3  ;;  %v1511_v44 = vpop.f32.mrf.mxu3  ;;  %v1610_v63 = vld [vmem:[%s2576_s5 + $0x10] sm:$0xff] }
 0x245   :  { %1664 = vmatpush.msrb.mxu1 %v1610_v63 }
 0x246   :  { %v1602_v20 = vmul.f32 %v2509_v40, %v1557_v13  ;;  %v1528_v22 = vmax.f32 %v1499_v16, 0.0 }
 0x247   :  { %1665 = vmatpush.msrb.mxu1 %v1609_v29 }
 0x248   :  { %v1558_v28 = vadd.f32 %v1528_v22, %v1527_v53  ;;  %v1639_v24 = vsel %vm1638_vm5, %v1602_v20, %v1637_v6 }
 0x249   :  { %v1452_v30 = vpop.f32.mrf.mxu2  ;;  %1666 = vmatpush.msrb.mxu1 %v1608_v26 }
 0x24a   :  { %v1559_v32 = vrot.slane %v1558_v28, 4  ;;  %v1453_v48 = vadd.f32 %v2489_v60, %v1452_v30 }
 0x24c   :  { %v1560_v56 = vadd.f32 %v1559_v32, %v1558_v28  ;;  %v1513_v55 = vpop.f32.mrf.mxu3  ;;  %v1502_v1 = vadd.f32 %v1501_v7, %v1453_v48 }
 0x24e   :  { %v1561_v33 = vrot.slane %v1560_v56, 2  ;;  %v1529_v10 = vmax.f32 %v1502_v1, 0.0 }
 0x250   :  { %v1562_v36 = vadd.f32 %v1561_v33, %v1560_v56 }
 0x251   :  { %v1454_v27 = vpop.f32.mrf.mxu2 }
 0x252   :  { %v1563_v37 = vrot.slane %v1562_v36, 1  ;;  %v1455_v2 = vadd.f32 %v2489_v60, %v1454_v27 }
 0x254   :  { %v1564_v41 = vadd.f32 %v1563_v37, %v1562_v36  ;;  %v1504_v35 = vadd.f32 %v1503_v52, %v1455_v2  ;;  %v1516_v7 = vpop.f32.mrf.mxu3 }
 0x256   :  { %v1603_v45 = vmul.f32 %v2509_v40, %v1564_v41  ;;  %v1530_v18 = vmax.f32 %v1504_v35, 0.0 }
 0x258   :  { %v2535_v49 = vsel %vm1640_vm15, %v1603_v45, %v1639_v24  ;;  %v1565_v50 = vadd.f32 %v1530_v18, %v1529_v10 }
 0x259   :  { %v1457_v54 = vpop.f32.mrf.mxu2 }
 0x25a   :  { %v1458_v38 = vadd.f32 %v2489_v60, %v1457_v54  ;;  %v1566_v9 = vrot.slane %v1565_v50, 4 }
 0x25c   :  { %v1507_v21 = vadd.f32 %v1506_v39, %v1458_v38  ;;  %v1567_v3 = vadd.f32 %v1566_v9, %v1565_v50  ;;  %v1518_v28 = vpop.f32.mrf.mxu3 }
 0x25e   :  { %v1531_v61 = vmax.f32 %v1507_v21, 0.0  ;;  %v1568_v19 = vrot.slane %v1567_v3, 2 }
 0x260   :  { %v1569_v32 = vadd.f32 %v1568_v19, %v1567_v3 }
 0x261   :  { %v1459_v51 = vpop.f32.mrf.mxu2 }
 0x262   :  { %v1460_v17 = vadd.f32 %v2489_v60, %v1459_v51  ;;  %v1570_v37 = vrot.slane %v1569_v32, 1 }
 0x264   :  { %v1509_v43 = vadd.f32 %v1508_v59, %v1460_v17  ;;  %v1571_v54 = vadd.f32 %v1570_v37, %v1569_v32 }
 0x266   :  { %v1532_v57 = vmax.f32 %v1509_v43, 0.0 }
 0x268   :  { %v1572_v46 = vadd.f32 %v1532_v57, %v1531_v61 }
 0x269   :  { %v1462_v25 = vpop.f32.mrf.mxu2 }
 0x26a   :  { %v1463_v5 = vadd.f32 %v2489_v60, %v1462_v25  ;;  %v1573_v62 = vrot.slane %v1572_v46, 4 }
 0x26c   :  { %v1512_v34 = vadd.f32 %v1511_v44, %v1463_v5  ;;  %v1574_v13 = vadd.f32 %v1573_v62, %v1572_v46 }
 0x26e   :  { %v1533_v8 = vmax.f32 %v1512_v34, 0.0  ;;  %v1575_v53 = vrot.slane %v1574_v13, 2 }
 0x270   :  { %v1576_v56 = vadd.f32 %v1575_v53, %v1574_v13 }
 0x271   :  { %v1464_v0 = vpop.f32.mrf.mxu2 }
 0x272   :  { %v1465_v47 = vadd.f32 %v2489_v60, %v1464_v0  ;;  %v1577_v41 = vrot.slane %v1576_v56, 1 }
 0x274   :  { %v1514_v6 = vadd.f32 %v1513_v55, %v1465_v47  ;;  %v1578_v59 = vadd.f32 %v1577_v41, %v1576_v56  ;;  %v1851_v55 = vld [vmem:[%s2577_s6] ss:$0 sm:$0xff] }
 0x276   :  { %v1534_v14 = vmax.f32 %v1514_v6, 0.0  ;;  %v1605_v2 = vmul.f32 %v2509_v40, %v1578_v59 }
 0x278   :  { %v1579_v15 = vadd.f32 %v1534_v14, %v1533_v8 }
 0x279   :  { %v1467_v11 = vpop.f32.mrf.mxu2 }
 0x27a   :  { %v1580_v12 = vrot.slane %v1579_v15, 4  ;;  %v1468_v16 = vadd.f32 %v2489_v60, %v1467_v11 }
 0x27c   :  { %v1581_v23 = vadd.f32 %v1580_v12, %v1579_v15  ;;  %v1517_v22 = vadd.f32 %v1516_v7, %v1468_v16 }
 0x27e   :  { %v1582_v24 = vrot.slane %v1581_v23, 2  ;;  %v1535_v33 = vmax.f32 %v1517_v22, 0.0 }
 0x280   :  { %v1583_v39 = vadd.f32 %v1582_v24, %v1581_v23 }
 0x281   :  { %v1469_v20 = vpop.f32.mrf.mxu2 }
 0x282   :  { %v1470_v52 = vadd.f32 %v2489_v60, %v1469_v20  ;;  %v1584_v42 = vrot.slane %v1583_v39, 1  ;;  %v1604_v60 = vmul.f32 %v2509_v40, %v1571_v54 }
 0x284   :  { %v1519_v30 = vadd.f32 %v1518_v28, %v1470_v52  ;;  %v1585_v31 = vadd.f32 %v1584_v42, %v1583_v39  ;;  %v1643_v48 = vsel %vm1642_vm8, %v1604_v60, %v2535_v49 }
 0x285   :  { %v1645_v35 = vsel %vm1644_vm2, %v1605_v2, %v1643_v48 }
 0x286   :  { %v1536_v36 = vmax.f32 %v1519_v30, 0.0  ;;  %v1606_v25 = vmul.f32 %v2509_v40, %v1585_v31 }
 0x288   :  { %v1586_v27 = vadd.f32 %v1536_v36, %v1535_v33  ;;  %v1647_v43 = vsel %vm1646_vm12, %v1606_v25, %v1645_v35 }
 0x28a   :  { %v1587_v4 = vrot.slane %v1586_v27, 4 }
 0x28c   :  { %v1588_v45 = vadd.f32 %v1587_v4, %v1586_v27 }
 0x28e   :  { %v1589_v51 = vrot.slane %v1588_v45, 2 }
 0x290   :  { %v1590_v58 = vadd.f32 %v1589_v51, %v1588_v45 }
 0x292   :  { %v1591_v44 = vrot.slane %v1590_v58, 1 }
 0x294   :  { %v1592_v17 = vadd.f32 %v1591_v44, %v1590_v58 }
 0x296   :  { %v1607_v38 = vmul.f32 %v2509_v40, %v1592_v17 }
 0x298   :  { %v1649_v5 = vsel %vm1648_vm7, %v1607_v38, %v1647_v43 }
 0x299   :  { %1667 = vmatmul.f32.vlgmr.msrb.gmra.mxu1 %v1649_v5 }
 0x316   :  { %v1668_v1 = vpop.f32.mrf.mxu1 }
 0x317   :  { %v1669_v21 = vadd.f32 %v1851_v55, %v1668_v1 }
 0x319   :  { %1672 = vst.msk [vmem:[%s2578_s7] sm:$0xff] %vm1671_vm0, %v1669_v21 }

</bundles_post_ra>
